<compile_context>
chip_gen: v6e
topology: v6e:2x2x1
jax: 0.10.0
libtpu: 0.0.40
codegen_flags: <defaults>
</compile_context>

<pallas_src>
import numpy as np
from functools import partial

import jax
import jax.numpy as jnp
from jax import lax
from jax.experimental import pallas as pl
from jax.experimental.pallas import tpu as pltpu


def _round_up(v, m):
    return (v + m - 1) // m * m


def _unet_conv_kernel(xcol_hbm, w1_ref, b1_ref, w2_ref, b2_ref, o_ref,
                      xbuf, y1_ref, sem):
    # xcol_hbm: (N, H, W, KP)    bf16  pre-im2col'd input, stays in HBM (manual DMA)
    # w1_ref:   (KP, CP)         bf16  conv1 im2col weights (zero padded)
    # b1_ref:   (1, CP)          f32
    # w2_ref:   (3, 3*CP, CP)    bf16  per-kh conv2 weights, kw packed along K
    # b2_ref:   (1, CP)          f32
    # o_ref:    (1, TH, W, CP)   bf16  output row tile (lane-dense)
    # xbuf:     (2, TH+2, W, KP) bf16  double-buffered halo window
    # y1_ref:   (TH+2, W, CP)    bf16  conv1 output (+1 row halo each side)
    # sem:      (2, 3)           DMA semaphores [slot, {core, top, bottom}]
    _, H, W, KP = xcol_hbm.shape
    _, TH, _, CP = o_ref.shape

    n = pl.program_id(0)
    r = pl.program_id(1)
    R = pl.num_programs(1)

    slot = r & 1
    nslot = (r + 1) & 1

    # ---------------- double-buffered halo DMA (HBM -> VMEM) -----------------
    # xbuf[slot] rows: 0 = top halo (global row r*TH-1), 1..TH = core rows,
    # TH+1 = bottom halo (global row r*TH+TH).  Out-of-image halo rows are never
    # fetched; the conv1 output rows they would feed are zeroed below instead.
    def copy_core(rr, s):
        return pltpu.make_async_copy(
            xcol_hbm.at[n, pl.ds(rr * TH, TH), :, :],
            xbuf.at[s, pl.ds(1, TH), :, :],
            sem.at[s, 0])

    def copy_top(rr, s):
        return pltpu.make_async_copy(
            xcol_hbm.at[n, pl.ds(rr * TH - 1, 1), :, :],
            xbuf.at[s, pl.ds(0, 1), :, :],
            sem.at[s, 1])

    def copy_bot(rr, s):
        return pltpu.make_async_copy(
            xcol_hbm.at[n, pl.ds(rr * TH + TH, 1), :, :],
            xbuf.at[s, pl.ds(TH + 1, 1), :, :],
            sem.at[s, 2])

    # Prologue: the first row tile of this image fetches its own window.
    @pl.when(r == 0)
    def _():
        copy_core(r, slot).start()

    @pl.when(jnp.logical_and(r == 0, r < R - 1))
    def _():
        copy_bot(r, slot).start()

    # Prefetch the next row tile's window into the other slot (overlaps with the
    # conv compute below).
    @pl.when(r + 1 < R)
    def _():
        copy_core(r + 1, nslot).start()
        copy_top(r + 1, nslot).start()

    @pl.when(r + 2 < R)
    def _():
        copy_bot(r + 1, nslot).start()

    # Wait for this tile's window (same descriptor shapes / sems as the starts).
    copy_core(r, slot).wait()

    @pl.when(r > 0)
    def _():
        copy_top(r, slot).wait()

    @pl.when(r < R - 1)
    def _():
        copy_bot(r, slot).wait()

    # ---------------- conv1: one im2col matmul, K = KP -----------------------
    patches = xbuf[slot]                                        # (TH+2, W, KP)
    acc1 = jnp.einsum("hwk,kc->hwc", patches, w1_ref[...],
                      preferred_element_type=jnp.float32)       # (TH+2, W, CP) f32
    y1f = jnp.maximum(acc1 + b1_ref[...].reshape(1, 1, CP), 0.0)
    y1_ref[...] = y1f.astype(jnp.bfloat16)

    # conv2 pads with zeros, not with conv1(zero-input): zero the single conv1 row
    # that lies outside the image.  Only the first/last row tiles pay this; interior
    # tiles no longer run a full-tensor mask.
    zrow = jnp.zeros((1, W, CP), jnp.bfloat16)

    @pl.when(r == 0)
    def _():
        y1_ref[0:1, :, :] = zrow

    @pl.when(r == R - 1)
    def _():
        y1_ref[TH + 1:TH + 2, :, :] = zrow

    # ---------------- conv2: 3 accumulating matmuls, K = 3*CP ----------------
    y1 = y1_ref[...]                                            # (TH+2, W, CP) bf16
    zcol = jnp.zeros((TH + 2, 1, CP), jnp.bfloat16)
    left = jnp.concatenate([zcol, y1[:, :W - 1, :]], axis=1)    # x[., w-1, .]
    right = jnp.concatenate([y1[:, 1:, :], zcol], axis=1)       # x[., w+1, .]
    # TODO(synk): replace the two shifted copies with pltpu.roll(..., axis=1)
    #             (XLU path) once sublane rolls are validated on all targets.
    slab = jnp.concatenate([left, y1, right], axis=-1)          # (TH+2, W, 3*CP)

    acc2 = jnp.zeros((TH, W, CP), jnp.float32)
    for kh in range(3):                                         # kh slices on the
        acc2 = acc2 + jnp.einsum("hwk,ko->hwo",                 # leading axis: free
                                 slab[kh:kh + TH], w2_ref[kh],
                                 preferred_element_type=jnp.float32)
    y2 = jnp.maximum(acc2 + b2_ref[...].reshape(1, 1, CP), 0.0)
    o_ref[0] = y2.astype(o_ref.dtype)


def _pick_vmem_limit():
    cap = None
    try:
        cap = int(pltpu.get_tpu_info().vmem_capacity_bytes)
    except Exception:
        cap = None
    if not cap or cap <= 0:
        cap = 64 * 1024 * 1024          # conservative fallback (v7x-sized VMEM)
    # Leave headroom below the physical arena; cap the request at 100 MiB so a
    # v5e/v6e (128 MiB) limit never asks for the whole thing.
    return min(cap * 3 // 4, 100 * 1024 * 1024)


@partial(jax.jit, static_argnames=("tile_h",))
def unet_conv_forward(x_nchw, w1_oihw, b1, w2_oihw, b2, *, tile_h=None):
    """UNetConv forward (norm_layer=None): Conv3x3+ReLU -> Conv3x3+ReLU.

    x_nchw: (N, Cin, H, W) f32; PyTorch-layout weights (OIHW) / biases.
    Returns (N, Cout, H, W) f32.
    """
    N, Cin, H, W = x_nchw.shape
    Cout = w1_oihw.shape[0]
    assert w1_oihw.shape == (Cout, Cin, 3, 3)
    assert w2_oihw.shape == (Cout, Cout, 3, 3)

    CP = _round_up(Cout, 128)        # lane-dense padded out-channel count
    K1 = 9 * Cin
    KP = _round_up(K1, 128)          # lane-dense conv1 im2col contraction

    vmem_limit = _pick_vmem_limit()

    if tile_h is None:
        budget = int(vmem_limit * 0.8)

        def step_bytes(th):
            rows = th + 2
            return (2 * rows * W * KP * 2              # xbuf halo window (x2 slots)
                    + rows * W * CP * 2                # y1 scratch (bf16)
                    + 2 * th * W * CP * 2              # output block (double-buffered)
                    + 2 * (KP * CP + 9 * CP * CP) * 2  # weight blocks (x2 buffers)
                    + rows * W * CP * 4                # acc1 (f32 temp)
                    + 2 * rows * W * CP * 2            # left/right taps (bf16 temps)
                    + rows * W * 3 * CP * 2            # slab (bf16 temp)
                    + 2 * th * W * CP * 4)             # acc2 / y2 (f32 temps)

        cands = [d for d in range(1, min(H, 64) + 1)
                 if H % d == 0 and step_bytes(d) <= budget]
        tile_h = max(cands) if cands else 1

    TH = int(tile_h)
    assert H % TH == 0, "H must be divisible by tile_h"   # TODO(synk): ragged H
    R = H // TH

    # ---- wrapper-side packing (for a fixed network, precompute the weights once) --
    # x: NCHW f32 -> NHWC bf16 -> pre-im2col over (kh, kw) -> (N, H, W, KP).
    # Keeps the kernel's halo scratch lane-dense and removes all in-kernel conv1 tap
    # assembly.  TODO(synk): for large in_size the 9x HBM blow-up of x makes a
    # direct (non-pre-im2col) conv1 path preferable.
    x_nhwc = jnp.transpose(x_nchw, (0, 2, 3, 1)).astype(jnp.bfloat16)
    xpad = jnp.pad(x_nhwc, ((0, 0), (1, 1), (1, 1), (0, 0)))
    taps = [xpad[:, kh:kh + H, kw:kw + W, :]
            for kh in range(3) for kw in range(3)]
    xcol = jnp.concatenate(taps, axis=-1)                       # (N, H, W, 9*Cin)
    if KP != K1:
        xcol = jnp.pad(xcol, ((0, 0), (0, 0), (0, 0), (0, KP - K1)))

    # conv1 weights: OIHW -> (kh, kw, ci) x co im2col matrix, padded to (KP, CP).
    w1_mat = jnp.transpose(w1_oihw, (2, 3, 1, 0)).reshape(K1, Cout)
    w1_mat = jnp.pad(w1_mat, ((0, KP - K1), (0, CP - Cout))).astype(jnp.bfloat16)

    # conv2 weights: per-kh matrices with the 3 kw taps packed along the contraction
    # axis -> (3, 3*CP, CP), so conv2 runs as 3 matmuls with K = 3*CP.
    w2_t = jnp.transpose(w2_oihw, (2, 3, 1, 0))                 # (3, 3, ci, co)
    w2_t = jnp.pad(w2_t, ((0, 0), (0, 0), (0, CP - Cout), (0, CP - Cout)))
    w2_pack = w2_t.reshape(3, 3 * CP, CP).astype(jnp.bfloat16)

    b1p = jnp.pad(b1, (0, CP - Cout)).reshape(1, CP).astype(jnp.float32)
    b2p = jnp.pad(b2, (0, CP - Cout)).reshape(1, CP).astype(jnp.float32)

    out = pl.pallas_call(
        _unet_conv_kernel,
        out_shape=jax.ShapeDtypeStruct((N, H, W, CP), jnp.bfloat16),
        grid_spec=pltpu.PrefetchScalarGridSpec(
            num_scalar_prefetch=0,
            grid=(N, R),
            in_specs=[
                pl.BlockSpec(memory_space=pl.ANY),              # xcol in HBM (manual DMA)
                pl.BlockSpec((KP, CP), lambda n, r: (0, 0)),
                pl.BlockSpec((1, CP), lambda n, r: (0, 0)),
                pl.BlockSpec((3, 3 * CP, CP), lambda n, r: (0, 0, 0)),
                pl.BlockSpec((1, CP), lambda n, r: (0, 0)),
            ],
            out_specs=pl.BlockSpec((1, TH, W, CP), lambda n, r: (n, r, 0, 0)),
            scratch_shapes=[
                pltpu.VMEM((2, TH + 2, W, KP), jnp.bfloat16),   # halo window, 2 slots
                pltpu.VMEM((TH + 2, W, CP), jnp.bfloat16),      # conv1 output
                pltpu.SemaphoreType.DMA((2, 3)),                # [slot, core/top/bot]
            ],
        ),
        compiler_params=pltpu.CompilerParams(
            # n is "parallel" (v7x megacore splits batches across its two cores);
            # r must stay "arbitrary": the cross-step halo prefetch relies on the
            # row tiles of one image running in order on one core.
            dimension_semantics=("parallel", "arbitrary"),
            vmem_limit_bytes=int(vmem_limit),
        ),
    )(xcol, w1_mat, b1p, w2_pack, b2p)

    # Single fused post-pass: drop channel padding, back to NCHW, widen to f32.
    return jnp.transpose(out[..., :Cout], (0, 3, 1, 2)).astype(jnp.float32)


def _reference(x_nchw, w1_oihw, b1, w2_oihw, b2):
    """Plain-JAX reference for Conv2d(k=3, pad=1)+ReLU twice, applying the same
    bf16 operand/output rounding the kernel uses (f32 accumulation)."""
    def q(t):
        return t.astype(jnp.bfloat16).astype(jnp.float32)

    def conv(x, w, b):
        y = lax.conv_general_dilated(
            q(x), q(w), window_strides=(1, 1), padding=((1, 1), (1, 1)),
            dimension_numbers=("NCHW", "OIHW", "NCHW"),
            preferred_element_type=jnp.float32)
        return jax.nn.relu(y + b[None, :, None, None])

    y = conv(conv(x_nchw, w1_oihw, b1), w2_oihw, b2)
    return q(y)   # kernel writes bf16; compare at matching precision


if __name__ == "__main__":
    N, Cin, Cout, H, W = 2, 4, 8, 16, 16

    key = jax.random.PRNGKey(0)
    k1, k2, k3, k4, k5 = jax.random.split(key, 5)

    x = jax.random.normal(k1, (N, Cin, H, W), jnp.float32)
    w1 = jax.random.normal(k2, (Cout, Cin, 3, 3), jnp.float32) / np.sqrt(Cin * 9)
    b1 = jax.random.normal(k3, (Cout,), jnp.float32) * 0.1
    w2 = jax.random.normal(k4, (Cout, Cout, 3, 3), jnp.float32) / np.sqrt(Cout * 9)
    b2 = jax.random.normal(k5, (Cout,), jnp.float32) * 0.1

    ref = _reference(x, w1, b1, w2, b2)

    # tile_h=4 -> 4 row tiles per image: exercises the r==0 / interior / r==R-1
    # halo branches and the cross-step double-buffered prefetch.
    out = jax.block_until_ready(unet_conv_forward(x, w1, b1, w2, b2, tile_h=4))
    assert out.shape == ref.shape == (N, Cout, H, W)
    np.testing.assert_allclose(np.asarray(out), np.asarray(ref), rtol=1e-2, atol=1e-2)

    # Default tiling heuristic (single row tile at this small H): R == 1 path.
    out2 = jax.block_until_ready(unet_conv_forward(x, w1, b1, w2, b2))
    np.testing.assert_allclose(np.asarray(out2), np.asarray(ref), rtol=1e-2, atol=1e-2)

    print("KERNEL_OK")
</pallas_src>

<mosaic_0001>
module attributes {stable_mosaic.version = 11 : i64} {
  func.func @_unet_conv_kernel(%arg0: i32, %arg1: i32, %arg2: memref<2x16x16x128xbf16, #tpu.memory_space<any>>, %arg3: memref<128x128xbf16, #tpu.memory_space<vmem>>, %arg4: memref<1x128xf32, #tpu.memory_space<vmem>>, %arg5: memref<3x384x128xbf16, #tpu.memory_space<vmem>>, %arg6: memref<1x128xf32, #tpu.memory_space<vmem>>, %arg7: memref<1x4x16x128xbf16, #tpu.memory_space<vmem>>, %arg8: memref<2x6x16x128xbf16, #tpu.memory_space<vmem>>, %arg9: memref<6x16x128xbf16, #tpu.memory_space<vmem>>, %arg10: memref<2x3x!tpu.dma_semaphore, #tpu.memory_space<semaphore_mem>>) attributes {dimension_semantics = [#tpu.dimension_semantics<parallel>, #tpu.dimension_semantics<arbitrary>], iteration_bounds = array<i64: 2, 4>, scalar_prefetch = 0 : i64, scratch_operands = 3 : i64, tpu.core_type = #tpu.core_type<tc>, window_params = [{}, {pipeline_mode = #tpu.pipeline_mode<synchronous>, transform_indices = @transform_1, window_bounds = array<i64: 128, 128>}, {pipeline_mode = #tpu.pipeline_mode<synchronous>, transform_indices = @transform_2, window_bounds = array<i64: 1, 128>}, {pipeline_mode = #tpu.pipeline_mode<synchronous>, transform_indices = @transform_3, window_bounds = array<i64: 3, 384, 128>}, {pipeline_mode = #tpu.pipeline_mode<synchronous>, transform_indices = @transform_4, window_bounds = array<i64: 1, 128>}, {transform_indices = @transform_5, window_bounds = array<i64: 1, 4, 16, 128>}]} {
    %c1_i32 = arith.constant 1 : i32
    %0 = arith.andi %arg1, %c1_i32 : i32
    %c1_i32_0 = arith.constant 1 : i32
    %1 = arith.addi %arg1, %c1_i32_0 : i32
    %c1_i32_1 = arith.constant 1 : i32
    %2 = arith.andi %1, %c1_i32_1 : i32
    %c0_i32 = arith.constant 0 : i32
    %3 = arith.cmpi eq, %arg1, %c0_i32 : i32
    %4 = arith.extui %3 : i1 to i32
    %c0_i32_2 = arith.constant 0 : i32
    %5 = arith.cmpi ne, %4, %c0_i32_2 : i32
    scf.if %5 {
      %c4_i32_57 = arith.constant 4 : i32
      %85 = arith.muli %arg1, %c4_i32_57 : i32
      %c0_i32_58 = arith.constant 0 : i32
      %c0_i32_59 = arith.constant 0 : i32
      %c0_i32_60 = arith.constant 0 : i32
      %86 = tpu.memref_slice %arg2[%arg0, %85, %c0_i32_59, %c0_i32_60] : memref<2x16x16x128xbf16, #tpu.memory_space<any>> -> memref<1x4x16x128xbf16, #tpu.memory_space<any>>
      %87 = tpu.memref_squeeze %86 : memref<1x4x16x128xbf16, #tpu.memory_space<any>> -> memref<4x16x128xbf16, #tpu.memory_space<any>>
      %c1_i32_61 = arith.constant 1 : i32
      %c0_i32_62 = arith.constant 0 : i32
      %c0_i32_63 = arith.constant 0 : i32
      %88 = tpu.memref_slice %arg8[%0, %c1_i32_61, %c0_i32_62, %c0_i32_63] : memref<2x6x16x128xbf16, #tpu.memory_space<vmem>> -> memref<1x4x16x128xbf16, #tpu.memory_space<vmem>>
      %89 = tpu.memref_squeeze %88 : memref<1x4x16x128xbf16, #tpu.memory_space<vmem>> -> memref<4x16x128xbf16, #tpu.memory_space<vmem>>
      %90 = tpu.memref_slice %arg10[%0, %c0_i32_58] : memref<2x3x!tpu.dma_semaphore, #tpu.memory_space<semaphore_mem>> -> memref<1x1x!tpu.dma_semaphore, #tpu.memory_space<semaphore_mem>>
      %91 = tpu.memref_squeeze %90 : memref<1x1x!tpu.dma_semaphore, #tpu.memory_space<semaphore_mem>> -> memref<!tpu.dma_semaphore, #tpu.memory_space<semaphore_mem>>
      tpu.enqueue_dma source(%87 : memref<4x16x128xbf16, #tpu.memory_space<any>>) target(%89 : memref<4x16x128xbf16, #tpu.memory_space<vmem>>) target_semaphore(%91 : memref<!tpu.dma_semaphore, #tpu.memory_space<semaphore_mem>>)
    } else {
    }
    %c0_i32_3 = arith.constant 0 : i32
    %6 = arith.cmpi eq, %arg1, %c0_i32_3 : i32
    %c3_i32 = arith.constant 3 : i32
    %7 = arith.cmpi slt, %arg1, %c3_i32 : i32
    %8 = arith.andi %6, %7 : i1
    %9 = arith.extui %8 : i1 to i32
    %c0_i32_4 = arith.constant 0 : i32
    %10 = arith.cmpi ne, %9, %c0_i32_4 : i32
    scf.if %10 {
      %c4_i32_57 = arith.constant 4 : i32
      %85 = arith.muli %arg1, %c4_i32_57 : i32
      %c4_i32_58 = arith.constant 4 : i32
      %86 = arith.addi %85, %c4_i32_58 : i32
      %c2_i32_59 = arith.constant 2 : i32
      %c0_i32_60 = arith.constant 0 : i32
      %c0_i32_61 = arith.constant 0 : i32
      %87 = tpu.memref_slice %arg2[%arg0, %86, %c0_i32_60, %c0_i32_61] : memref<2x16x16x128xbf16, #tpu.memory_space<any>> -> memref<1x1x16x128xbf16, #tpu.memory_space<any>>
      %88 = tpu.memref_squeeze %87 : memref<1x1x16x128xbf16, #tpu.memory_space<any>> -> memref<1x16x128xbf16, #tpu.memory_space<any>>
      %c5_i32 = arith.constant 5 : i32
      %c0_i32_62 = arith.constant 0 : i32
      %c0_i32_63 = arith.constant 0 : i32
      %89 = tpu.memref_slice %arg8[%0, %c5_i32, %c0_i32_62, %c0_i32_63] : memref<2x6x16x128xbf16, #tpu.memory_space<vmem>> -> memref<1x1x16x128xbf16, #tpu.memory_space<vmem>>
      %90 = tpu.memref_squeeze %89 : memref<1x1x16x128xbf16, #tpu.memory_space<vmem>> -> memref<1x16x128xbf16, #tpu.memory_space<vmem>>
      %91 = tpu.memref_slice %arg10[%0, %c2_i32_59] : memref<2x3x!tpu.dma_semaphore, #tpu.memory_space<semaphore_mem>> -> memref<1x1x!tpu.dma_semaphore, #tpu.memory_space<semaphore_mem>>
      %92 = tpu.memref_squeeze %91 : memref<1x1x!tpu.dma_semaphore, #tpu.memory_space<semaphore_mem>> -> memref<!tpu.dma_semaphore, #tpu.memory_space<semaphore_mem>>
      tpu.enqueue_dma source(%88 : memref<1x16x128xbf16, #tpu.memory_space<any>>) target(%90 : memref<1x16x128xbf16, #tpu.memory_space<vmem>>) target_semaphore(%92 : memref<!tpu.dma_semaphore, #tpu.memory_space<semaphore_mem>>)
    } else {
    }
    %c1_i32_5 = arith.constant 1 : i32
    %11 = arith.addi %arg1, %c1_i32_5 : i32
    %c4_i32 = arith.constant 4 : i32
    %12 = arith.cmpi slt, %11, %c4_i32 : i32
    %13 = arith.extui %12 : i1 to i32
    %c0_i32_6 = arith.constant 0 : i32
    %14 = arith.cmpi ne, %13, %c0_i32_6 : i32
    scf.if %14 {
      %c1_i32_57 = arith.constant 1 : i32
      %85 = arith.addi %arg1, %c1_i32_57 : i32
      %c4_i32_58 = arith.constant 4 : i32
      %86 = arith.muli %85, %c4_i32_58 : i32
      %c0_i32_59 = arith.constant 0 : i32
      %c0_i32_60 = arith.constant 0 : i32
      %c0_i32_61 = arith.constant 0 : i32
      %87 = tpu.memref_slice %arg2[%arg0, %86, %c0_i32_60, %c0_i32_61] : memref<2x16x16x128xbf16, #tpu.memory_space<any>> -> memref<1x4x16x128xbf16, #tpu.memory_space<any>>
      %88 = tpu.memref_squeeze %87 : memref<1x4x16x128xbf16, #tpu.memory_space<any>> -> memref<4x16x128xbf16, #tpu.memory_space<any>>
      %c1_i32_62 = arith.constant 1 : i32
      %c0_i32_63 = arith.constant 0 : i32
      %c0_i32_64 = arith.constant 0 : i32
      %89 = tpu.memref_slice %arg8[%2, %c1_i32_62, %c0_i32_63, %c0_i32_64] : memref<2x6x16x128xbf16, #tpu.memory_space<vmem>> -> memref<1x4x16x128xbf16, #tpu.memory_space<vmem>>
      %90 = tpu.memref_squeeze %89 : memref<1x4x16x128xbf16, #tpu.memory_space<vmem>> -> memref<4x16x128xbf16, #tpu.memory_space<vmem>>
      %91 = tpu.memref_slice %arg10[%2, %c0_i32_59] : memref<2x3x!tpu.dma_semaphore, #tpu.memory_space<semaphore_mem>> -> memref<1x1x!tpu.dma_semaphore, #tpu.memory_space<semaphore_mem>>
      %92 = tpu.memref_squeeze %91 : memref<1x1x!tpu.dma_semaphore, #tpu.memory_space<semaphore_mem>> -> memref<!tpu.dma_semaphore, #tpu.memory_space<semaphore_mem>>
      tpu.enqueue_dma source(%88 : memref<4x16x128xbf16, #tpu.memory_space<any>>) target(%90 : memref<4x16x128xbf16, #tpu.memory_space<vmem>>) target_semaphore(%92 : memref<!tpu.dma_semaphore, #tpu.memory_space<semaphore_mem>>)
      %c1_i32_65 = arith.constant 1 : i32
      %93 = arith.addi %arg1, %c1_i32_65 : i32
      %c4_i32_66 = arith.constant 4 : i32
      %94 = arith.muli %93, %c4_i32_66 : i32
      %c1_i32_67 = arith.constant 1 : i32
      %95 = arith.subi %94, %c1_i32_67 : i32
      %c1_i32_68 = arith.constant 1 : i32
      %c0_i32_69 = arith.constant 0 : i32
      %c0_i32_70 = arith.constant 0 : i32
      %96 = tpu.memref_slice %arg2[%arg0, %95, %c0_i32_69, %c0_i32_70] : memref<2x16x16x128xbf16, #tpu.memory_space<any>> -> memref<1x1x16x128xbf16, #tpu.memory_space<any>>
      %97 = tpu.memref_squeeze %96 : memref<1x1x16x128xbf16, #tpu.memory_space<any>> -> memref<1x16x128xbf16, #tpu.memory_space<any>>
      %c0_i32_71 = arith.constant 0 : i32
      %c0_i32_72 = arith.constant 0 : i32
      %c0_i32_73 = arith.constant 0 : i32
      %98 = tpu.memref_slice %arg8[%2, %c0_i32_71, %c0_i32_72, %c0_i32_73] : memref<2x6x16x128xbf16, #tpu.memory_space<vmem>> -> memref<1x1x16x128xbf16, #tpu.memory_space<vmem>>
      %99 = tpu.memref_squeeze %98 : memref<1x1x16x128xbf16, #tpu.memory_space<vmem>> -> memref<1x16x128xbf16, #tpu.memory_space<vmem>>
      %100 = tpu.memref_slice %arg10[%2, %c1_i32_68] : memref<2x3x!tpu.dma_semaphore, #tpu.memory_space<semaphore_mem>> -> memref<1x1x!tpu.dma_semaphore, #tpu.memory_space<semaphore_mem>>
      %101 = tpu.memref_squeeze %100 : memref<1x1x!tpu.dma_semaphore, #tpu.memory_space<semaphore_mem>> -> memref<!tpu.dma_semaphore, #tpu.memory_space<semaphore_mem>>
      tpu.enqueue_dma source(%97 : memref<1x16x128xbf16, #tpu.memory_space<any>>) target(%99 : memref<1x16x128xbf16, #tpu.memory_space<vmem>>) target_semaphore(%101 : memref<!tpu.dma_semaphore, #tpu.memory_space<semaphore_mem>>)
    } else {
    }
    %c2_i32 = arith.constant 2 : i32
    %15 = arith.addi %arg1, %c2_i32 : i32
    %c4_i32_7 = arith.constant 4 : i32
    %16 = arith.cmpi slt, %15, %c4_i32_7 : i32
    %17 = arith.extui %16 : i1 to i32
    %c0_i32_8 = arith.constant 0 : i32
    %18 = arith.cmpi ne, %17, %c0_i32_8 : i32
    scf.if %18 {
      %c1_i32_57 = arith.constant 1 : i32
      %85 = arith.addi %arg1, %c1_i32_57 : i32
      %c4_i32_58 = arith.constant 4 : i32
      %86 = arith.muli %85, %c4_i32_58 : i32
      %c4_i32_59 = arith.constant 4 : i32
      %87 = arith.addi %86, %c4_i32_59 : i32
      %c2_i32_60 = arith.constant 2 : i32
      %c0_i32_61 = arith.constant 0 : i32
      %c0_i32_62 = arith.constant 0 : i32
      %88 = tpu.memref_slice %arg2[%arg0, %87, %c0_i32_61, %c0_i32_62] : memref<2x16x16x128xbf16, #tpu.memory_space<any>> -> memref<1x1x16x128xbf16, #tpu.memory_space<any>>
      %89 = tpu.memref_squeeze %88 : memref<1x1x16x128xbf16, #tpu.memory_space<any>> -> memref<1x16x128xbf16, #tpu.memory_space<any>>
      %c5_i32 = arith.constant 5 : i32
      %c0_i32_63 = arith.constant 0 : i32
      %c0_i32_64 = arith.constant 0 : i32
      %90 = tpu.memref_slice %arg8[%2, %c5_i32, %c0_i32_63, %c0_i32_64] : memref<2x6x16x128xbf16, #tpu.memory_space<vmem>> -> memref<1x1x16x128xbf16, #tpu.memory_space<vmem>>
      %91 = tpu.memref_squeeze %90 : memref<1x1x16x128xbf16, #tpu.memory_space<vmem>> -> memref<1x16x128xbf16, #tpu.memory_space<vmem>>
      %92 = tpu.memref_slice %arg10[%2, %c2_i32_60] : memref<2x3x!tpu.dma_semaphore, #tpu.memory_space<semaphore_mem>> -> memref<1x1x!tpu.dma_semaphore, #tpu.memory_space<semaphore_mem>>
      %93 = tpu.memref_squeeze %92 : memref<1x1x!tpu.dma_semaphore, #tpu.memory_space<semaphore_mem>> -> memref<!tpu.dma_semaphore, #tpu.memory_space<semaphore_mem>>
      tpu.enqueue_dma source(%89 : memref<1x16x128xbf16, #tpu.memory_space<any>>) target(%91 : memref<1x16x128xbf16, #tpu.memory_space<vmem>>) target_semaphore(%93 : memref<!tpu.dma_semaphore, #tpu.memory_space<semaphore_mem>>)
    } else {
    }
    %c4_i32_9 = arith.constant 4 : i32
    %19 = arith.muli %arg1, %c4_i32_9 : i32
    %c0_i32_10 = arith.constant 0 : i32
    %c0_i32_11 = arith.constant 0 : i32
    %c0_i32_12 = arith.constant 0 : i32
    %20 = tpu.memref_slice %arg2[%arg0, %19, %c0_i32_11, %c0_i32_12] : memref<2x16x16x128xbf16, #tpu.memory_space<any>> -> memref<1x4x16x128xbf16, #tpu.memory_space<any>>
    %21 = tpu.memref_squeeze %20 : memref<1x4x16x128xbf16, #tpu.memory_space<any>> -> memref<4x16x128xbf16, #tpu.memory_space<any>>
    %c1_i32_13 = arith.constant 1 : i32
    %c0_i32_14 = arith.constant 0 : i32
    %c0_i32_15 = arith.constant 0 : i32
    %22 = tpu.memref_slice %arg8[%0, %c1_i32_13, %c0_i32_14, %c0_i32_15] : memref<2x6x16x128xbf16, #tpu.memory_space<vmem>> -> memref<1x4x16x128xbf16, #tpu.memory_space<vmem>>
    %23 = tpu.memref_squeeze %22 : memref<1x4x16x128xbf16, #tpu.memory_space<vmem>> -> memref<4x16x128xbf16, #tpu.memory_space<vmem>>
    %24 = tpu.memref_slice %arg10[%0, %c0_i32_10] : memref<2x3x!tpu.dma_semaphore, #tpu.memory_space<semaphore_mem>> -> memref<1x1x!tpu.dma_semaphore, #tpu.memory_space<semaphore_mem>>
    %25 = tpu.memref_squeeze %24 : memref<1x1x!tpu.dma_semaphore, #tpu.memory_space<semaphore_mem>> -> memref<!tpu.dma_semaphore, #tpu.memory_space<semaphore_mem>>
    tpu.wait_dma2 semaphore(%25 : memref<!tpu.dma_semaphore, #tpu.memory_space<semaphore_mem>>) src(%21 : memref<4x16x128xbf16, #tpu.memory_space<any>>) dst(%23 : memref<4x16x128xbf16, #tpu.memory_space<vmem>>)
    %c0_i32_16 = arith.constant 0 : i32
    %26 = arith.cmpi sgt, %arg1, %c0_i32_16 : i32
    %27 = arith.extui %26 : i1 to i32
    %c0_i32_17 = arith.constant 0 : i32
    %28 = arith.cmpi ne, %27, %c0_i32_17 : i32
    scf.if %28 {
      %c4_i32_57 = arith.constant 4 : i32
      %85 = arith.muli %arg1, %c4_i32_57 : i32
      %c1_i32_58 = arith.constant 1 : i32
      %86 = arith.subi %85, %c1_i32_58 : i32
      %c1_i32_59 = arith.constant 1 : i32
      %c0_i32_60 = arith.constant 0 : i32
      %c0_i32_61 = arith.constant 0 : i32
      %87 = tpu.memref_slice %arg2[%arg0, %86, %c0_i32_60, %c0_i32_61] : memref<2x16x16x128xbf16, #tpu.memory_space<any>> -> memref<1x1x16x128xbf16, #tpu.memory_space<any>>
      %88 = tpu.memref_squeeze %87 : memref<1x1x16x128xbf16, #tpu.memory_space<any>> -> memref<1x16x128xbf16, #tpu.memory_space<any>>
      %c0_i32_62 = arith.constant 0 : i32
      %c0_i32_63 = arith.constant 0 : i32
      %c0_i32_64 = arith.constant 0 : i32
      %89 = tpu.memref_slice %arg8[%0, %c0_i32_62, %c0_i32_63, %c0_i32_64] : memref<2x6x16x128xbf16, #tpu.memory_space<vmem>> -> memref<1x1x16x128xbf16, #tpu.memory_space<vmem>>
      %90 = tpu.memref_squeeze %89 : memref<1x1x16x128xbf16, #tpu.memory_space<vmem>> -> memref<1x16x128xbf16, #tpu.memory_space<vmem>>
      %91 = tpu.memref_slice %arg10[%0, %c1_i32_59] : memref<2x3x!tpu.dma_semaphore, #tpu.memory_space<semaphore_mem>> -> memref<1x1x!tpu.dma_semaphore, #tpu.memory_space<semaphore_mem>>
      %92 = tpu.memref_squeeze %91 : memref<1x1x!tpu.dma_semaphore, #tpu.memory_space<semaphore_mem>> -> memref<!tpu.dma_semaphore, #tpu.memory_space<semaphore_mem>>
      tpu.wait_dma2 semaphore(%92 : memref<!tpu.dma_semaphore, #tpu.memory_space<semaphore_mem>>) src(%88 : memref<1x16x128xbf16, #tpu.memory_space<any>>) dst(%90 : memref<1x16x128xbf16, #tpu.memory_space<vmem>>)
    } else {
    }
    %c3_i32_18 = arith.constant 3 : i32
    %29 = arith.cmpi slt, %arg1, %c3_i32_18 : i32
    %30 = arith.extui %29 : i1 to i32
    %c0_i32_19 = arith.constant 0 : i32
    %31 = arith.cmpi ne, %30, %c0_i32_19 : i32
    scf.if %31 {
      %c4_i32_57 = arith.constant 4 : i32
      %85 = arith.muli %arg1, %c4_i32_57 : i32
      %c4_i32_58 = arith.constant 4 : i32
      %86 = arith.addi %85, %c4_i32_58 : i32
      %c2_i32_59 = arith.constant 2 : i32
      %c0_i32_60 = arith.constant 0 : i32
      %c0_i32_61 = arith.constant 0 : i32
      %87 = tpu.memref_slice %arg2[%arg0, %86, %c0_i32_60, %c0_i32_61] : memref<2x16x16x128xbf16, #tpu.memory_space<any>> -> memref<1x1x16x128xbf16, #tpu.memory_space<any>>
      %88 = tpu.memref_squeeze %87 : memref<1x1x16x128xbf16, #tpu.memory_space<any>> -> memref<1x16x128xbf16, #tpu.memory_space<any>>
      %c5_i32 = arith.constant 5 : i32
      %c0_i32_62 = arith.constant 0 : i32
      %c0_i32_63 = arith.constant 0 : i32
      %89 = tpu.memref_slice %arg8[%0, %c5_i32, %c0_i32_62, %c0_i32_63] : memref<2x6x16x128xbf16, #tpu.memory_space<vmem>> -> memref<1x1x16x128xbf16, #tpu.memory_space<vmem>>
      %90 = tpu.memref_squeeze %89 : memref<1x1x16x128xbf16, #tpu.memory_space<vmem>> -> memref<1x16x128xbf16, #tpu.memory_space<vmem>>
      %91 = tpu.memref_slice %arg10[%0, %c2_i32_59] : memref<2x3x!tpu.dma_semaphore, #tpu.memory_space<semaphore_mem>> -> memref<1x1x!tpu.dma_semaphore, #tpu.memory_space<semaphore_mem>>
      %92 = tpu.memref_squeeze %91 : memref<1x1x!tpu.dma_semaphore, #tpu.memory_space<semaphore_mem>> -> memref<!tpu.dma_semaphore, #tpu.memory_space<semaphore_mem>>
      tpu.wait_dma2 semaphore(%92 : memref<!tpu.dma_semaphore, #tpu.memory_space<semaphore_mem>>) src(%88 : memref<1x16x128xbf16, #tpu.memory_space<any>>) dst(%90 : memref<1x16x128xbf16, #tpu.memory_space<vmem>>)
    } else {
    }
    %32 = arith.index_cast %0 : i32 to index
    %c0 = arith.constant 0 : index
    %c0_20 = arith.constant 0 : index
    %c0_21 = arith.constant 0 : index
    %33 = vector.load %arg8[%32, %c0, %c0_20, %c0_21] : memref<2x6x16x128xbf16, #tpu.memory_space<vmem>>, vector<1x6x16x128xbf16>
    %34 = vector.shape_cast %33 : vector<1x6x16x128xbf16> to vector<6x16x128xbf16>
    %c0_22 = arith.constant 0 : index
    %c0_23 = arith.constant 0 : index
    %35 = vector.load %arg3[%c0_22, %c0_23] : memref<128x128xbf16, #tpu.memory_space<vmem>>, vector<128x128xbf16>
    "tpu.trace_start"() <{level = 10 : i32, message = "hwk,kc->hwc"}> : () -> ()
    %cst = arith.constant dense<0.000000e+00> : vector<6x16x128xf32>
    %36 = tpu.matmul %34, %35, %cst {dimension_numbers = #tpu.dot_dimension_numbers<[2], [0], [0, 1], [1], [0, 0, 0, 1, 1, 1], [], []>} : vector<6x16x128xbf16>, vector<128x128xbf16>, vector<6x16x128xf32> -> vector<6x16x128xf32>
    "tpu.trace_stop"() : () -> ()
    %c0_24 = arith.constant 0 : index
    %c0_25 = arith.constant 0 : index
    %37 = vector.load %arg4[%c0_24, %c0_25] : memref<1x128xf32, #tpu.memory_space<vmem>>, vector<1x128xf32>
    %38 = vector.shape_cast %37 : vector<1x128xf32> to vector<1x1x128xf32>
    %39 = vector.broadcast %38 : vector<1x1x128xf32> to vector<6x16x128xf32>
    %40 = arith.addf %36, %39 : vector<6x16x128xf32>
    %cst_26 = arith.constant 0.000000e+00 : f32
    %41 = vector.broadcast %cst_26 : f32 to vector<6x16x128xf32>
    %42 = arith.maximumf %40, %41 : vector<6x16x128xf32>
    %43 = arith.truncf %42 : vector<6x16x128xf32> to vector<6x16x128xbf16>
    %c0_27 = arith.constant 0 : index
    %c0_28 = arith.constant 0 : index
    %c0_29 = arith.constant 0 : index
    %44 = vector.load %arg9[%c0_27, %c0_28, %c0_29] : memref<6x16x128xbf16, #tpu.memory_space<vmem>>, vector<6x16x128xbf16>
    tpu.vector_store %arg9[%c0_27, %c0_28, %c0_29], %43 {strides = array<i32>} : memref<6x16x128xbf16, #tpu.memory_space<vmem>>, vector<6x16x128xbf16>,
    %cst_30 = arith.constant 0.000000e+00 : bf16
    %45 = vector.broadcast %cst_30 : bf16 to vector<1x16x128xbf16>
    %c0_i32_31 = arith.constant 0 : i32
    %46 = arith.cmpi eq, %arg1, %c0_i32_31 : i32
    %47 = arith.extui %46 : i1 to i32
    %c0_i32_32 = arith.constant 0 : i32
    %48 = arith.cmpi ne, %47, %c0_i32_32 : i32
    scf.if %48 {
      %c0_57 = arith.constant 0 : index
      %c0_58 = arith.constant 0 : index
      %c0_59 = arith.constant 0 : index
      %85 = vector.load %arg9[%c0_57, %c0_58, %c0_59] : memref<6x16x128xbf16, #tpu.memory_space<vmem>>, vector<1x16x128xbf16>
      tpu.vector_store %arg9[%c0_57, %c0_58, %c0_59], %45 {strides = array<i32>} : memref<6x16x128xbf16, #tpu.memory_space<vmem>>, vector<1x16x128xbf16>,
    } else {
    }
    %c3_i32_33 = arith.constant 3 : i32
    %49 = arith.cmpi eq, %arg1, %c3_i32_33 : i32
    %50 = arith.extui %49 : i1 to i32
    %c0_i32_34 = arith.constant 0 : i32
    %51 = arith.cmpi ne, %50, %c0_i32_34 : i32
    scf.if %51 {
      %c5 = arith.constant 5 : index
      %c0_57 = arith.constant 0 : index
      %c0_58 = arith.constant 0 : index
      %85 = vector.load %arg9[%c5, %c0_57, %c0_58] : memref<6x16x128xbf16, #tpu.memory_space<vmem>>, vector<1x16x128xbf16>
      tpu.vector_store %arg9[%c5, %c0_57, %c0_58], %45 {strides = array<i32>} : memref<6x16x128xbf16, #tpu.memory_space<vmem>>, vector<1x16x128xbf16>,
    } else {
    }
    %c0_35 = arith.constant 0 : index
    %c0_36 = arith.constant 0 : index
    %c0_37 = arith.constant 0 : index
    %52 = vector.load %arg9[%c0_35, %c0_36, %c0_37] : memref<6x16x128xbf16, #tpu.memory_space<vmem>>, vector<6x16x128xbf16>
    %cst_38 = arith.constant 0.000000e+00 : bf16
    %53 = vector.broadcast %cst_38 : bf16 to vector<6x1x128xbf16>
    %54 = vector.extract_strided_slice %52 {offsets = [0, 0, 0], sizes = [6, 15, 128], strides = [1, 1, 1]} : vector<6x16x128xbf16> to vector<6x15x128xbf16>
    %55 = tpu.concatenate %53, %54 in 1 : vector<6x1x128xbf16>, vector<6x15x128xbf16> -> vector<6x16x128xbf16>
    %56 = vector.extract_strided_slice %52 {offsets = [0, 1, 0], sizes = [6, 15, 128], strides = [1, 1, 1]} : vector<6x16x128xbf16> to vector<6x15x128xbf16>
    %57 = tpu.concatenate %56, %53 in 1 : vector<6x15x128xbf16>, vector<6x1x128xbf16> -> vector<6x16x128xbf16>
    %58 = tpu.concatenate %55, %52, %57 in 2 : vector<6x16x128xbf16>, vector<6x16x128xbf16>, vector<6x16x128xbf16> -> vector<6x16x384xbf16>
    %cst_39 = arith.constant 0.000000e+00 : f32
    %59 = vector.broadcast %cst_39 : f32 to vector<4x16x128xf32>
    %60 = vector.extract_strided_slice %58 {offsets = [0, 0, 0], sizes = [4, 16, 384], strides = [1, 1, 1]} : vector<6x16x384xbf16> to vector<4x16x384xbf16>
    %c0_40 = arith.constant 0 : index
    %c0_41 = arith.constant 0 : index
    %c0_42 = arith.constant 0 : index
    %61 = vector.load %arg5[%c0_40, %c0_41, %c0_42] : memref<3x384x128xbf16, #tpu.memory_space<vmem>>, vector<1x384x128xbf16>
    %62 = vector.shape_cast %61 : vector<1x384x128xbf16> to vector<384x128xbf16>
    "tpu.trace_start"() <{level = 10 : i32, message = "hwk,ko->hwo"}> : () -> ()
    %cst_43 = arith.constant dense<0.000000e+00> : vector<4x16x128xf32>
    %63 = tpu.matmul %60, %62, %cst_43 {dimension_numbers = #tpu.dot_dimension_numbers<[2], [0], [0, 1], [1], [0, 0, 0, 1, 1, 1], [], []>} : vector<4x16x384xbf16>, vector<384x128xbf16>, vector<4x16x128xf32> -> vector<4x16x128xf32>
    "tpu.trace_stop"() : () -> ()
    %64 = arith.addf %59, %63 : vector<4x16x128xf32>
    %65 = vector.extract_strided_slice %58 {offsets = [1, 0, 0], sizes = [4, 16, 384], strides = [1, 1, 1]} : vector<6x16x384xbf16> to vector<4x16x384xbf16>
    %c1 = arith.constant 1 : index
    %c0_44 = arith.constant 0 : index
    %c0_45 = arith.constant 0 : index
    %66 = vector.load %arg5[%c1, %c0_44, %c0_45] : memref<3x384x128xbf16, #tpu.memory_space<vmem>>, vector<1x384x128xbf16>
    %67 = vector.shape_cast %66 : vector<1x384x128xbf16> to vector<384x128xbf16>
    "tpu.trace_start"() <{level = 10 : i32, message = "hwk,ko->hwo"}> : () -> ()
    %cst_46 = arith.constant dense<0.000000e+00> : vector<4x16x128xf32>
    %68 = tpu.matmul %65, %67, %cst_46 {dimension_numbers = #tpu.dot_dimension_numbers<[2], [0], [0, 1], [1], [0, 0, 0, 1, 1, 1], [], []>} : vector<4x16x384xbf16>, vector<384x128xbf16>, vector<4x16x128xf32> -> vector<4x16x128xf32>
    "tpu.trace_stop"() : () -> ()
    %69 = arith.addf %64, %68 : vector<4x16x128xf32>
    %70 = vector.extract_strided_slice %58 {offsets = [2, 0, 0], sizes = [4, 16, 384], strides = [1, 1, 1]} : vector<6x16x384xbf16> to vector<4x16x384xbf16>
    %c2 = arith.constant 2 : index
    %c0_47 = arith.constant 0 : index
    %c0_48 = arith.constant 0 : index
    %71 = vector.load %arg5[%c2, %c0_47, %c0_48] : memref<3x384x128xbf16, #tpu.memory_space<vmem>>, vector<1x384x128xbf16>
    %72 = vector.shape_cast %71 : vector<1x384x128xbf16> to vector<384x128xbf16>
    "tpu.trace_start"() <{level = 10 : i32, message = "hwk,ko->hwo"}> : () -> ()
    %cst_49 = arith.constant dense<0.000000e+00> : vector<4x16x128xf32>
    %73 = tpu.matmul %70, %72, %cst_49 {dimension_numbers = #tpu.dot_dimension_numbers<[2], [0], [0, 1], [1], [0, 0, 0, 1, 1, 1], [], []>} : vector<4x16x384xbf16>, vector<384x128xbf16>, vector<4x16x128xf32> -> vector<4x16x128xf32>
    "tpu.trace_stop"() : () -> ()
    %74 = arith.addf %69, %73 : vector<4x16x128xf32>
    %c0_50 = arith.constant 0 : index
    %c0_51 = arith.constant 0 : index
    %75 = vector.load %arg6[%c0_50, %c0_51] : memref<1x128xf32, #tpu.memory_space<vmem>>, vector<1x128xf32>
    %76 = vector.shape_cast %75 : vector<1x128xf32> to vector<1x1x128xf32>
    %77 = vector.broadcast %76 : vector<1x1x128xf32> to vector<4x16x128xf32>
    %78 = arith.addf %74, %77 : vector<4x16x128xf32>
    %cst_52 = arith.constant 0.000000e+00 : f32
    %79 = vector.broadcast %cst_52 : f32 to vector<4x16x128xf32>
    %80 = arith.maximumf %78, %79 : vector<4x16x128xf32>
    %81 = arith.truncf %80 : vector<4x16x128xf32> to vector<4x16x128xbf16>
    %c0_53 = arith.constant 0 : index
    %c0_54 = arith.constant 0 : index
    %c0_55 = arith.constant 0 : index
    %c0_56 = arith.constant 0 : index
    %82 = vector.load %arg7[%c0_53, %c0_54, %c0_55, %c0_56] : memref<1x4x16x128xbf16, #tpu.memory_space<vmem>>, vector<1x4x16x128xbf16>
    %83 = vector.shape_cast %82 : vector<1x4x16x128xbf16> to vector<4x16x128xbf16>
    %84 = vector.shape_cast %81 : vector<4x16x128xbf16> to vector<1x4x16x128xbf16>
    tpu.vector_store %arg7[%c0_53, %c0_54, %c0_55, %c0_56], %84 {strides = array<i32>} : memref<1x4x16x128xbf16, #tpu.memory_space<vmem>>, vector<1x4x16x128xbf16>,
    return
  }
  func.func @transform_1(%arg0: i32, %arg1: i32) -> (i32, i32) {
    %c0_i32 = arith.constant 0 : i32
    %c0_i32_0 = arith.constant 0 : i32
    %c0_i32_1 = arith.constant 0 : i32
    return %c0_i32, %c0_i32_0 : i32, i32
  }
  func.func @transform_2(%arg0: i32, %arg1: i32) -> (i32, i32) {
    %c0_i32 = arith.constant 0 : i32
    %c0_i32_0 = arith.constant 0 : i32
    %c0_i32_1 = arith.constant 0 : i32
    return %c0_i32, %c0_i32_0 : i32, i32
  }
  func.func @transform_3(%arg0: i32, %arg1: i32) -> (i32, i32, i32) {
    %c0_i32 = arith.constant 0 : i32
    %c0_i32_0 = arith.constant 0 : i32
    %c0_i32_1 = arith.constant 0 : i32
    %c0_i32_2 = arith.constant 0 : i32
    return %c0_i32, %c0_i32_0, %c0_i32_1 : i32, i32, i32
  }
  func.func @transform_4(%arg0: i32, %arg1: i32) -> (i32, i32) {
    %c0_i32 = arith.constant 0 : i32
    %c0_i32_0 = arith.constant 0 : i32
    %c0_i32_1 = arith.constant 0 : i32
    return %c0_i32, %c0_i32_0 : i32, i32
  }
  func.func @transform_5(%arg0: i32, %arg1: i32) -> (i32, i32, i32, i32) {
    %c0_i32 = arith.constant 0 : i32
    %c0_i32_0 = arith.constant 0 : i32
    %c0_i32_1 = arith.constant 0 : i32
    return %arg0, %arg1, %c0_i32, %c0_i32_0 : i32, i32, i32, i32
  }
}

</mosaic_0001>

<bundles_post_ra>
// kernel: unet_conv_forward.1
= control target key start
LH: loop header
LB: loop body
LE: loop exit
PB: predicated region body
PF: predicated region fallthrough
CT: control target
= control target key end

     0   :  { %s3105_s18 = smov 0   ;;  %s3107_s19 = smov 0   ;;  %s3658_s0 = inlined_call_operand.vmem [shape: bf16[2,16,16,128], index: 0, kind: input, shape index: {}]   ;;  %s3659_s1 = inlined_call_operand.vmem [shape: bf16[128,128], index: 1, kind: input, shape index: {}]   ;;  %s3660_s2 = inlined_call_operand.vmem [shape: f32[1,128], index: 2, kind: input, shape index: {}]   ;;  %s3661_s3 = inlined_call_operand.vmem [shape: bf16[3,384,128], index: 3, kind: input, shape index: {}]   ;;  %s3662_s4 = inlined_call_operand.vmem [shape: f32[1,128], index: 4, kind: input, shape index: {}]   ;;  %s3663_s5 = inlined_call_operand.vmem [shape: bf16[2,16,16,128], index: 5, kind: output, shape index: {}]  }
   0x1   :  { %3664 = sst [smem:[#allocation14_spill]] %s3663_s5  ;;  %s3109_s20 = smov 0  }
   0x2   :  { %s3111_s21 = smov 0   ;;  %s3113_s22 = smov 0  }
   0x3 LB: > { %s24_s23 = sadd.s32 1, %s3063_s20  ;;  %s27_s24 = sadd.s32 1, %s3067_s21  ;;  %s3071_s22 = sphi %s3113_s22, %s15_s22   ;;  %s3067_s21 = sphi %s3111_s21, %s3675_s21   ;;  %s3063_s20 = sphi %s3109_s20, %s3674_s20   ;;  %s3059_s19 = sphi %s3107_s19, %s3673_s19   ;;  %s3055_s18 = sphi %s3105_s18, %s3672_s18  }
   0x4   : > { %p25_p0 = scmp.ge.s32.totalorder %s24_s23, 4  ;;  %p2233_p1 = scmp.ge.s32.totalorder %s3071_s22, 1 }
   0x5   : > { %p167_p2 = scmp.lt.s32.totalorder %s3071_s22, 9 }
   0x6   : > { %s3677_s23 = smov (%p25_p0, %s24_s23), 0  ;;  %s3679_s24 = smov (!%p25_p0, %s27_s24), %s3067_s21 }
   0x7   : > { %p168_p3 = pnand %p2233_p1, %p167_p2  ;;  %p29_p4 = scmp.ge.s32.totalorder %s3679_s24, 2 }
   0x8   : > { %s3140_s25 = sshll.u32 (!%p168_p3), %s3055_s18, 2  ;;  %p194_p5 = scmp.lt.s32.totalorder (!%p168_p3), %s3059_s19, 1 }
   0x9   : > { %s3681_s24 = smov (%p29_p4, %s3679_s24), 0  ;;  %171 = sbr.rel (%p168_p3) target bundleno = 682 (0x2aa), region = 36 }
   0xa   : > { %3665 = sst [smem:[#allocation13_spill]] %s3681_s24  ;;  %p196_p6 = scmp.lt.s32.totalorder (!%p168_p3), %s3140_s25, 15 }
   0xb   : > { %s3145_s26 = sand.u32 (!%p168_p3), 1, %s3055_s18  ;;  %s206_s30 = sadd.s32 (!%p168_p3), 1, %s3055_s18 }
   0xc   : > { %s3152_s7 = sand.u32 (!%p168_p3), 1, %s206_s30  ;;  %p208_p7 = scmp.eq.s32.totalorder (!%p168_p3), %s3055_s18, 0 }
   0xd   : > { %s3666_s5 = sld [smem:[#allocation14_spill]] (!%p168_p3)  ;;  %p2238_p8 = scmp.ne.s32.totalorder (!%p168_p3), %s3055_s18, 0 }
   0xe   : > { %s195_s27 = scalar_select %p194_p5, %s3059_s19, 1 }
   0xf   : > { %s197_s28 = scalar_select %p196_p6, %s3140_s25, 15 }
  0x10   : > { %s2236_s29 = sshll.u32 %s195_s27, 5  ;;  %211 = sbr.rel (%p2238_p8) target bundleno = 27 (0x1b), region = 40 }
  0x11   : > { %s2235_s6 = sshll.u32 %s197_s28, 1  ;;  %s2512_s13 = sshll.u32 (!%p2238_p8), %s3055_s18, 3 }
  0x12   : > { %s200_s8 = sadd.s32 %s2236_s29, %s2235_s6  ;;  %s2241_s14 = sshll.u32 (!%p2238_p8), %s3059_s19, 5 }
  0x13   : > { %s2237_s9 = sshll.u32 %s200_s8, 2  ;;  %s215_s15 = sadd.s32 (!%p2238_p8), %s2512_s13, %s2241_s14 }
  0x14   : > { %s3158_s12 = scalar_lea.vmem %s3666_s5, %s2237_s9  ;;  %s2243_s16 = smul.u32 (!%p2238_p8), 48, %s3145_s26 }
  0x15   : > { %s2242_s17 = sshll.u32 %s215_s15, 2  ;;  %s222_s27 = smul.u32 3, %s3145_s26 }
  0x16   : > { %s217_s6 = scalar_lea.vmem %s3658_s0, %s2242_s17  ;;  %s2090_s8 = scalar_lea.vmem [#allocation2], %s2243_s16 }
  0x17   : > { %v257_v0 = vld [vmem:[%s217_s6] sm:$0xff]  ;;  %v259_v1 = vld [vmem:[%s217_s6 + $0x8] sm:$0xff]  ;;  %v261_v2 = vld [vmem:[%s217_s6 + $0x10] sm:$0xff]  ;;  %s223_s9 = scalar_lea.sflag [#allocation4], %s222_s27 }
  0x18   : > { %2244 = vst [vmem:[%s2090_s8 + $0x8] sm:$0xff] %v257_v0  ;;  %2245 = vst [vmem:[%s2090_s8 + $0x10] sm:$0xff] %v259_v1  ;;  %v263_v3 = vld [vmem:[%s217_s6 + $0x18] sm:$0xff] }
  0x19   : > { %2246 = vst [vmem:[%s2090_s8 + $0x18] sm:$0xff] %v261_v2  ;;  %2247 = vst [vmem:[%s2090_s8 + $0x20] sm:$0xff] %v263_v3 }
  0x1a   : > { %272 = vsyncadd %s223_s9, 512 }
  0x1b PF: > { %p273_p9 = scmp.lt.s32.totalorder %s3055_s18, 3 }
  0x1d   : > { %p274_p10 = pnand %p273_p9, %p208_p7 }
  0x1e   : > { %s2513_s10 = sshll.u32 (!%p274_p10), %s3055_s18, 3  ;;  %s2251_s11 = sshll.u32 (!%p274_p10), %s3059_s19, 5 }
  0x1f   : > { %277 = sbr.rel (%p274_p10) target bundleno = 39 (0x27), region = 78  ;;  %s2097_s13 = sadd.s32 (!%p274_p10), %s2513_s10, %s2251_s11 }
  0x20   : > { %s2253_s14 = smul.u32 (!%p274_p10), 48, %s3145_s26  ;;  %s2252_s15 = sshll.u32 (!%p274_p10), %s2097_s13, 2 }
  0x21   : > { %s2105_s16 = smul.u32 (!%p274_p10), 3, %s3145_s26  ;;  %s2099_s28 = scalar_lea.vmem (!%p274_p10), %s3658_s0, %s2252_s15 }
  0x22   : > { %s2103_s8 = scalar_lea.vmem (!%p274_p10), [#allocation2], %s2253_s14 }
  0x23   : > { %s2106_s29 = scalar_lea.sflag (!%p274_p10), [#allocation4], %s2105_s16 }
  0x24   : > { %v2254_v4 = vld [vmem:[%s2099_s28 + $0x20] sm:$0xff]  ;;  %s2107_s6 = scalar_lea.sflag %s2106_s29, 2 [#allocation4] }
  0x25   : > { %2255 = vst [vmem:[%s2103_s8 + $0x28] sm:$0xff] %v2254_v4 }
  0x26   : > { %334 = vsyncadd %s2107_s6, 128 }
  0x27 PF: > { %p2258_p11 = scmp.ge.s32.totalorder %s206_s30, 4 }
  0x28   : > { %s2515_s9 = sadd.s32 (!%p2258_p11), 4, %s3140_s25  ;;  %s2260_s10 = sshll.u32 (!%p2258_p11), %s3059_s19, 5 }
  0x29   : > { %338 = sbr.rel (%p2258_p11) target bundleno = 57 (0x39), region = 116  ;;  %s2261_s11 = sshll.u32 (!%p2258_p11), %s3055_s18, 3 }
  0x2a   : > { %s2264_s13 = smul.u32 (!%p2258_p11), 48, %s3152_s7  ;;  %s2110_s15 = sadd.s32 (!%p2258_p11), %s2261_s11, %s2260_s10 }
  0x2b   : > { %s349_s16 = smul.u32 (!%p2258_p11), 3, %s3152_s7  ;;  %s2263_s17 = sshll.u32 (!%p2258_p11), %s2110_s15, 2 }
  0x2c   : > { %s2112_s28 = scalar_lea.vmem (!%p2258_p11), %s3658_s0, %s2263_s17  ;;  %s2116_s30 = scalar_lea.vmem (!%p2258_p11), [#allocation2], %s2264_s13 }
  0x2d   : > { %s350_s25 = scalar_lea.sflag (!%p2258_p11), [#allocation4], %s349_s16 }
  0x2e   : > { %v2265_v5 = vld [vmem:[%s2112_s28 + $0x20] sm:$0xff]  ;;  %v2267_v6 = vld [vmem:[%s2112_s28 + $0x28] sm:$0xff]  ;;  %v2269_v7 = vld [vmem:[%s2112_s28 + $0x30] sm:$0xff] }
  0x2f   : > { %2266 = vst [vmem:[%s2116_s30 + $0x8] sm:$0xff] %v2265_v5  ;;  %2268 = vst [vmem:[%s2116_s30 + $0x10] sm:$0xff] %v2267_v6  ;;  %v2271_v8 = vld [vmem:[%s2112_s28 + $0x38] sm:$0xff] }
  0x30   : > { %2270 = vst [vmem:[%s2116_s30 + $0x18] sm:$0xff] %v2269_v7  ;;  %2272 = vst [vmem:[%s2116_s30 + $0x20] sm:$0xff] %v2271_v8 }
  0x31   : > { %399 = vsyncadd %s350_s25, 512  ;;  %s2275_s29 = sadd.s32 4294967295, %s2515_s9  ;;  %s2129_s6 = scalar_lea.sflag %s350_s25, 1 [#allocation4] }
  0x32   : > { %s2276_s8 = sshll.u32 %s2275_s29, 1 }
  0x33   : > { %s402_s11 = sadd.s32 %s2276_s8, %s2260_s10 }
  0x34   : > { %s2277_s15 = sshll.u32 %s402_s11, 2 }
  0x35   : > { %s404_s17 = scalar_lea.vmem %s3658_s0, %s2277_s15 }
  0x36   : > { %v442_v9 = vld [vmem:[%s404_s17] sm:$0xff] }
  0x37   : > { %443 = vst [vmem:[%s2116_s30] sm:$0xff] %v442_v9 }
  0x38   : > { %451 = vsyncadd %s2129_s6, 128 }
  0x39 PF: > { %s452_s13 = sadd.s32 2, %s3055_s18 }
  0x3a   : > { %p2279_p12 = scmp.ge.s32.totalorder %s452_s13, 4 }
  0x3b   : > { %s2517_s9 = sshll.u32 (!%p2279_p12), %s3055_s18, 3  ;;  %s2282_s16 = sshll.u32 (!%p2279_p12), %s3059_s19, 5 }
  0x3c   : > { %456 = sbr.rel (%p2279_p12) target bundleno = 68 (0x44), region = 188  ;;  %s2133_s10 = sadd.s32 (!%p2279_p12), %s2517_s9, %s2282_s16 }
  0x3d   : > { %s2284_s14 = smul.u32 (!%p2279_p12), 48, %s3152_s7  ;;  %s2283_s27 = sshll.u32 (!%p2279_p12), %s2133_s10, 2 }
  0x3e   : > { %s2141_s28 = smul.u32 (!%p2279_p12), 3, %s3152_s7  ;;  %s2135_s30 = scalar_lea.vmem (!%p2279_p12), %s3658_s0, %s2283_s27 }
  0x3f   : > { %s2139_s6 = scalar_lea.vmem (!%p2279_p12), [#allocation2], %s2284_s14 }
  0x40   : > { %s2142_s25 = scalar_lea.sflag (!%p2279_p12), [#allocation4], %s2141_s28 }
  0x41   : > { %v2285_v10 = vld [vmem:[%s2135_s30 + $0x40] sm:$0xff]  ;;  %s2143_s29 = scalar_lea.sflag %s2142_s25, 2 [#allocation4] }
  0x42   : > { %2286 = vst [vmem:[%s2139_s6 + $0x28] sm:$0xff] %v2285_v10 }
  0x43   : > { %513 = vsyncadd %s2143_s29, 128 }
  0x44 PF: > { %s514_s8 = smul.u32 3, %s3145_s26 }
  0x46   : > { %s515_s11 = scalar_lea.sflag [#allocation4], %s514_s8 }
  0x47   : > { %3043 = dma.done.wait %s515_s11, 512 }
  0x48   : > { %3044 = vsyncadd %s515_s11, 4294966784  ;;  %p2887_p13 = scmp.gt.s32.totalorder %s3055_s18, 0  ;;  %s2148_s19 = scalar_lea.sflag %s515_s11, 1 [#allocation4] }
  0x4a   : > { %3046 = dma.done.wait (%p2887_p13), %s2148_s19, 128 }
  0x4b   : > { %3048 = vsyncadd (%p2887_p13), %s2148_s19, 4294967168  ;;  %s2151_s7 = scalar_lea.sflag %s515_s11, 2 [#allocation4] }
  0x4c   : > { %3050 = dma.done.wait (%p273_p9), %s2151_s7, 128 }
  0x4d   : > { %3052 = vsyncadd (%p273_p9), %s2151_s7, 4294967168  ;;  %v2931_v11 = vld [vmem:[%s3659_s1 + $0x38] sm:$0xff]   ;;  %v2932_v12 = vld [vmem:[%s3659_s1 + $0x30] sm:$0xff]   ;;  %s2518_s16 = smul.u32 48, %s3145_s26 }
  0x4e   : > { %2767 = vmatprep.subr.bf16.mxu0 %v2931_v11  ;;  %v2933_v13 = vld [vmem:[%s3659_s1 + $0x28] sm:$0xff]   ;;  %v2934_v14 = vld [vmem:[%s3659_s1 + $0x20] sm:$0xff]   ;;  %v2935_v16 = vld [vmem:[%s3659_s1 + $0x18] sm:$0xff]  }
  0x4f   : > { %2768 = vmatpush3.bf16.msra.mxu0 %v2931_v11  ;;  %s544_s5 = scalar_lea.vmem [#allocation2], %s2518_s16  ;;  %v2936_v17 = vld [vmem:[%s3659_s1 + $0x10] sm:$0xff]   ;;  %v2937_v18 = vld [vmem:[%s3659_s1 + $0x8] sm:$0xff]   ;;  %v2938_v19 = vld [vmem:[%s3659_s1] sm:$0xff]  }
  0x50   : > { %2769 = vmatprep.subr.bf16.mxu0 %v2932_v12  ;;  %v2939_v15 = vld [vmem:[%s544_s5] sm:$0xff]   ;;  %v2940_v20 = vld [vmem:[%s544_s5 + $0x8] sm:$0xff]   ;;  %v2941_v21 = vld [vmem:[%s544_s5 + $0x10] sm:$0xff]  }
  0x51   : > { %2783 = vmatprep.mubr.bf16.mxu0 %v2939_v15  ;;  %v2942_v22 = vld [vmem:[%s544_s5 + $0x18] sm:$0xff]   ;;  %v2943_v23 = vld [vmem:[%s544_s5 + $0x20] sm:$0xff]   ;;  %v2944_v24 = vld [vmem:[%s544_s5 + $0x28] sm:$0xff]  }
  0x52   : > { %v2292_v26 = vld [vmem:[%s3660_s2] ss:$0 sm:$0xff] }
  0x53   : > { %2770 = vmatpush3.bf16.msra.mxu0 %v2932_v12 }
  0x54   : > { %2771 = vmatprep.subr.bf16.mxu0 %v2933_v13 }
  0x57   : > { %2772 = vmatpush3.bf16.msra.mxu0 %v2933_v13 }
  0x58   : > { %2773 = vmatprep.subr.bf16.mxu0 %v2934_v14 }
  0x5b   : > { %2774 = vmatpush3.bf16.msra.mxu0 %v2934_v14 }
  0x5c   : > { %2775 = vmatprep.subr.bf16.mxu0 %v2935_v16 }
  0x5f   : > { %2776 = vmatpush3.bf16.msra.mxu0 %v2935_v16 }
  0x60   : > { %2777 = vmatprep.subr.bf16.mxu0 %v2936_v17 }
  0x63   : > { %2778 = vmatpush3.bf16.msra.mxu0 %v2936_v17 }
  0x64   : > { %2779 = vmatprep.subr.bf16.mxu0 %v2937_v18 }
  0x67   : > { %2780 = vmatpush3.bf16.msra.mxu0 %v2937_v18 }
  0x68   : > { %2781 = vmatprep.subr.bf16.mxu0 %v2938_v19 }
  0x6b   : > { %2782 = vmatpush3.bf16.msra.mxu0 %v2938_v19 }
  0x6e   : > { %2784 = vmatmul.mubr.bf16.vlgmr.msra.gmra.mxu0 %v2940_v20 }
  0x6f   : > { %2787 = vmatprep.mubr.bf16.mxu0 %v2941_v21 }
  0x76   : > { %2788 = vmatmul.mubr.bf16.gmra.mxu0 %v2942_v22 }
  0x77   : > { %2791 = vmatprep.mubr.bf16.mxu0 %v2943_v23 }
  0x7e   : > { %2792 = vmatmul.mubr.bf16.gmra.mxu0 %v2944_v24 }
 0x12e   : > { %v2785_v25 = vpop.f32.mrf.mxu0 }
 0x12f   : > { %v707_v28 = vadd.f32 %v2785_v25, %v2292_v26 }
 0x130   : > { %v698_v27 = vpop.f32.mrf.mxu0 }
 0x131   : > { %v699_v30 = vadd.f32 %v2292_v26, %v698_v27  ;;  %v747_v33 = vmax.f32 %v707_v28, 0.0 }
 0x132   : > { %v2786_v29 = vpop.f32.mrf.mxu0 }
 0x133   : > { %v710_v31 = vadd.f32 %v2786_v29, %v2292_v26  ;;  %v745_v37 = vmax.f32 %v699_v30, 0.0 }
 0x134   : > { %v701_v32 = vpop.f32.mrf.mxu0 }
 0x135   : > { %v748_v34 = vmax.f32 %v710_v31, 0.0  ;;  %v702_v35 = vadd.f32 %v2292_v26, %v701_v32 }
 0x136   : > { %v2789_v36 = vpop.f32.mrf.mxu0 }
 0x137   : > { %v2547_v38 = vpack.c.bf16 %v748_v34, %v747_v33  ;;  %v746_v39 = vmax.f32 %v702_v35, 0.0  ;;  %v723_v42 = vadd.f32 %v2789_v36, %v2292_v26 }
 0x138   : > { %v714_v40 = vpop.f32.mrf.mxu0 }
 0x139   : > { %2589 = vst [vmem:[#allocation3 + $0x8] sm:$0xff] %v2547_v38   ;;  %v2542_v41 = vpack.c.bf16 %v746_v39, %v745_v37  ;;  %v715_v44 = vadd.f32 %v2292_v26, %v714_v40  ;;  %v751_v47 = vmax.f32 %v723_v42, 0.0 }
 0x13a   : > { %v2790_v43 = vpop.f32.mrf.mxu0 }
 0x13b   : > { %2543 = vst [vmem:[#allocation3] sm:$0xff] %v2542_v41   ;;  %v726_v45 = vadd.f32 %v2790_v43, %v2292_v26  ;;  %v749_v51 = vmax.f32 %v715_v44, 0.0 }
 0x13c   : > { %v717_v46 = vpop.f32.mrf.mxu0 }
 0x13d   : > { %v752_v48 = vmax.f32 %v726_v45, 0.0  ;;  %v718_v49 = vadd.f32 %v2292_v26, %v717_v46 }
 0x13e   : > { %v2793_v50 = vpop.f32.mrf.mxu0 }
 0x13f   : > { %v2557_v52 = vpack.c.bf16 %v752_v48, %v751_v47  ;;  %v750_v53 = vmax.f32 %v718_v49, 0.0  ;;  %v739_v56 = vadd.f32 %v2793_v50, %v2292_v26 }
 0x140   : > { %v730_v54 = vpop.f32.mrf.mxu0 }
 0x141   : > { %2591 = vst [vmem:[#allocation3 + $0x18] sm:$0xff] %v2557_v52   ;;  %v2552_v55 = vpack.c.bf16 %v750_v53, %v749_v51  ;;  %v731_v58 = vadd.f32 %v2292_v26, %v730_v54  ;;  %v755_v61 = vmax.f32 %v739_v56, 0.0 }
 0x142   : > { %v2794_v57 = vpop.f32.mrf.mxu0 }
 0x143   : > { %2590 = vst [vmem:[#allocation3 + $0x10] sm:$0xff] %v2552_v55   ;;  %v742_v59 = vadd.f32 %v2794_v57, %v2292_v26  ;;  %v753_v0 = vmax.f32 %v731_v58, 0.0 }
 0x144   : > { %v733_v60 = vpop.f32.mrf.mxu0 }
 0x145   : > { %v756_v62 = vmax.f32 %v742_v59, 0.0  ;;  %v734_v63 = vadd.f32 %v2292_v26, %v733_v60 }
 0x147   : > { %v2567_v1 = vpack.c.bf16 %v756_v62, %v755_v61  ;;  %v754_v2 = vmax.f32 %v734_v63, 0.0  ;;  %819 = sbr.rel (%p2238_p8) target bundleno = 334 (0x14e), region = 234 }
 0x149   : > { %2593 = vst [vmem:[#allocation3 + $0x28] sm:$0xff] %v2567_v1   ;;  %v2562_v3 = vpack.c.bf16 %v754_v2, %v753_v0 }
 0x14b   : > { %2592 = vst [vmem:[#allocation3 + $0x20] sm:$0xff] %v2562_v3  }
 0x14c   : > { %v3073_v4 = vmov 0  }
 0x14d   : > { %820 = vst [vmem:[#allocation3] sm:$0xf] %v3073_v4  ;;  %821 = vst [vmem:[#allocation3 + $0x4] sm:$0xf] %v3073_v4 }
 0x14e PF: > { %p2320_p0 = scmp.ne.s32.totalorder %s3055_s18, 3 }
 0x150   : > { %825 = sbr.rel (%p2320_p0) target bundleno = 343 (0x157), region = 238 }
 0x155   : > { %v3074_v5 = vmov 0  }
 0x156   : > { %827 = vst [vmem:[#allocation3 + $0x28] sm:$0xf] %v3074_v5  ;;  %828 = vst [vmem:[#allocation3 + $0x2c] sm:$0xf] %v3074_v5 }
 0x157 PF: > { %v2945_v6 = vld [vmem:[%s3661_s3 + $0x138] sm:$0xff]   ;;  %v2948_v9 = vld [vmem:[%s3661_s3 + $0x130] sm:$0xff]   ;;  %v2951_v12 = vld [vmem:[%s3661_s3 + $0x128] sm:$0xff]   ;;  %vm919_vm0 = vcmask 1040384   ;;  %vm946_vm1 = vcmask 1047552  }
 0x158   : > { %v2946_v7 = vld [vmem:[%s3661_s3 + $0xf8] sm:$0xff]   ;;  %2611 = vmatprep.subr.bf16.mxu1 %v2945_v6  ;;  %v2949_v10 = vld [vmem:[%s3661_s3 + $0xf0] sm:$0xff]   ;;  %v2952_v13 = vld [vmem:[%s3661_s3 + $0xe8] sm:$0xff]   ;;  %vm920_vm2 = vsmask.f32 256 }
 0x159   : > { %v2947_v8 = vld [vmem:[%s3661_s3 + $0x178] sm:$0xff]   ;;  %2612 = vmatpush3.bf16.msra.mxu1 %v2946_v7  ;;  %v2950_v11 = vld [vmem:[%s3661_s3 + $0x170] sm:$0xff]   ;;  %v2953_v14 = vld [vmem:[%s3661_s3 + $0x168] sm:$0xff]   ;;  %vm947_vm4 = vsmask.f32 7424 }
 0x15a   : > { %2795 = vmatprep.subr.bf16.mxu0 %v2947_v8  ;;  %2613 = vmatprep.subr.bf16.mxu1 %v2948_v9  ;;  %v2954_v15 = vld [vmem:[%s3661_s3 + $0x120] sm:$0xff]   ;;  %v2957_v18 = vld [vmem:[%s3661_s3 + $0x118] sm:$0xff]   ;;  %v2960_v21 = vld [vmem:[%s3661_s3 + $0x110] sm:$0xff]  }
 0x15b   : > { %2796 = vmatpush3.bf16.msra.mxu0 %v2947_v8  ;;  %v2955_v16 = vld [vmem:[%s3661_s3 + $0xe0] sm:$0xff]   ;;  %v2959_v19 = vld [vmem:[%s3661_s3 + $0x158] sm:$0xff]   ;;  %v2962_v22 = vld [vmem:[%s3661_s3 + $0x150] sm:$0xff]  }
 0x15c   : > { %2797 = vmatprep.subr.bf16.mxu0 %v2950_v11  ;;  %v2956_v17 = vld [vmem:[%s3661_s3 + $0x160] sm:$0xff]   ;;  %v2958_v20 = vld [vmem:[%s3661_s3 + $0xd8] sm:$0xff]   ;;  %v2961_v23 = vld [vmem:[%s3661_s3 + $0xd0] sm:$0xff]  }
 0x15d   : > { %2614 = vmatpush3.bf16.msra.mxu1 %v2949_v10  ;;  %v2963_v24 = vld [vmem:[%s3661_s3 + $0x108] sm:$0xff]   ;;  %v2966_v27 = vld [vmem:[%s3661_s3 + $0x100] sm:$0xff]   ;;  %vm3317_vm3 = vmand %vm919_vm0, %vm920_vm2 }
 0x15e   : > { %2615 = vmatprep.subr.bf16.mxu1 %v2951_v12  ;;  %v2964_v25 = vld [vmem:[%s3661_s3 + $0xc8] sm:$0xff]   ;;  %v2967_v29 = vld [vmem:[%s3661_s3 + $0xc0] sm:$0xff]   ;;  %v2970_v34 = vld [vmem:[%s3661_s3 + $0x78] sm:$0xff]  }
 0x15f   : > { %2798 = vmatpush3.bf16.msra.mxu0 %v2950_v11  ;;  %v2965_v26 = vld [vmem:[%s3661_s3 + $0x148] sm:$0xff]   ;;  %v2968_v30 = vld [vmem:[%s3661_s3 + $0x140] sm:$0xff]   ;;  %vm3325_vm5 = vmand %vm946_vm1, %vm947_vm4 }
 0x160   : > { %2799 = vmatprep.subr.bf16.mxu0 %v2953_v14  ;;  %v3306_v28 = vld [vmem:[#allocation3 + $0x8] sm:$0xff]   ;;  %v3329_v38 = vld [vmem:[#allocation3 + $0x10] sm:$0xff]   ;;  %v2973_v41 = vld [vmem:[%s3661_s3 + $0xb8] sm:$0xff]  }
 0x161   : > { %2616 = vmatpush3.bf16.msra.mxu1 %v2952_v13  ;;  %1234 = vmatprep.mubr.bf16.mxu1 %v3306_v28  ;;  %v879_v31 = vshrl.u32 %v3306_v28, 16  ;;  %v882_v32 = vshll.u32 %v3306_v28, 16  ;;  %v2971_v42 = vld [vmem:[%s3661_s3 + $0x38] sm:$0xff]   ;;  %v886_v43 = vshrl.u32 %v3329_v38, 16  ;;  %v889_v44 = vshll.u32 %v3329_v38, 16  ;;  %v2974_v45 = vld [vmem:[%s3661_s3 + $0x70] sm:$0xff]  }
 0x162   : > { %2617 = vmatprep.subr.bf16.mxu1 %v2954_v15  ;;  %v2975_v49 = vld [vmem:[%s3661_s3 + $0x30] sm:$0xff]   ;;  %v2977_v54 = vld [vmem:[%s3661_s3 + $0x68] sm:$0xff]   ;;  %v2980_v59 = vld [vmem:[%s3661_s3 + $0x60] sm:$0xff]  }
 0x163   : > { %2800 = vmatpush3.bf16.msra.mxu0 %v2953_v14  ;;  %v881_v35 = vrot.slane %v879_v31, 7  ;;  %v930_v36 = vrot.slane %v882_v32, 1  ;;  %v932_v48 = vrot.slane %v889_v44, 1  ;;  %v888_v50 = vrot.slane %v886_v43, 7  ;;  %v2976_v52 = vld [vmem:[%s3661_s3 + $0xb0] sm:$0xff]   ;;  %v2978_v56 = vld [vmem:[%s3661_s3 + $0x28] sm:$0xff]  }
 0x164   : > { %2801 = vmatprep.subr.bf16.mxu0 %v2956_v17  ;;  %v2979_v57 = vld [vmem:[%s3661_s3 + $0xa8] sm:$0xff]   ;;  %v3380_v60 = vld [vmem:[#allocation3 + $0x18] sm:$0xff]   ;;  %v2981_v61 = vld [vmem:[%s3661_s3 + $0x20] sm:$0xff]  }
 0x165   : > { %2618 = vmatpush3.bf16.msra.mxu1 %v2955_v16  ;;  %v884_v39 = vor.u32 %v882_v32, %v881_v35  ;;  %v931_v40 = vor.u32 %v930_v36, %v879_v31  ;;  %v933_v51 = vor.u32 %v932_v48, %v886_v43  ;;  %v891_v53 = vor.u32 %v889_v44, %v888_v50  ;;  %v2982_v62 = vld [vmem:[%s3661_s3 + $0xa0] sm:$0xff]   ;;  %v2984_v1 = vld [vmem:[%s3661_s3 + $0x58] sm:$0xff]   ;;  %v2988_v16 = vld [vmem:[%s3661_s3 + $0x50] sm:$0xff]  }
 0x166   : > { %2619 = vmatprep.subr.bf16.mxu1 %v2957_v18  ;;  %v893_v63 = vshrl.u32 %v3380_v60, 16  ;;  %v896_v0 = vshll.u32 %v3380_v60, 16  ;;  %v3394_v2 = vld [vmem:[#allocation3 + $0x20] sm:$0xff]   ;;  %v2985_v10 = vld [vmem:[%s3661_s3 + $0x18] sm:$0xff]   ;;  %v2989_v18 = vld [vmem:[%s3661_s3 + $0x10] sm:$0xff]  }
 0x167   : > { %2802 = vmatpush3.bf16.msra.mxu0 %v2956_v17  ;;  %v3344_v46 = vsel %vm3317_vm3, 0, %v884_v39  ;;  %v3348_v47 = vsel %vm3325_vm5, %v931_v40, 0  ;;  %v3364_v55 = vsel %vm3325_vm5, %v933_v51, 0  ;;  %v3375_v58 = vsel %vm3317_vm3, 0, %v891_v53  ;;  %v2987_v15 = vld [vmem:[%s3661_s3 + $0x98] sm:$0xff]   ;;  %v2996_v31 = vld [vmem:[%s3661_s3 + $0x80] sm:$0xff]  }
 0x168   : > { %2803 = vmatprep.subr.bf16.mxu0 %v2959_v19  ;;  %2811 = vmatprep.mubr.bf16.mxu0 %v3348_v47  ;;  %v895_v3 = vrot.slane %v893_v63, 7  ;;  %v934_v4 = vrot.slane %v896_v0, 1  ;;  %v900_v5 = vshrl.u32 %v3394_v2, 16  ;;  %v903_v6 = vshll.u32 %v3394_v2, 16  ;;  %v2999_v40 = vld [vmem:[%s3661_s3 + $0x1b8] sm:$0xff]   ;;  %v3001_v44 = vld [vmem:[%s3661_s3 + $0x1f0] sm:$0xff]  }
 0x169   : > { %2620 = vmatpush3.bf16.msra.mxu1 %v2958_v20  ;;  %v3466_v43 = vld [vmem:[%s3661_s3 + $0x238] sm:$0xff]   ;;  %v3477_v48 = vld [vmem:[%s3661_s3 + $0x230] sm:$0xff]   ;;  %v3005_v50 = vld [vmem:[%s3661_s3 + $0x1a8] sm:$0xff]  }
 0x16a   : > { %2621 = vmatprep.subr.bf16.mxu1 %v2960_v21  ;;  %v898_v7 = vor.u32 %v896_v0, %v895_v3  ;;  %v935_v8 = vor.u32 %v934_v4, %v893_v63  ;;  %v936_v9 = vrot.slane %v903_v6, 1  ;;  %v902_v11 = vrot.slane %v900_v5, 7  ;;  %v2991_v21 = vld [vmem:[%s3661_s3 + $0x48] sm:$0xff]   ;;  %v3010_v53 = vld [vmem:[%s3661_s3 + $0x1d8] sm:$0xff]   ;;  %v3019_v63 = vld [vmem:[%s3661_s3 + $0x1c0] sm:$0xff]  }
 0x16b   : > { %2804 = vmatpush3.bf16.msra.mxu0 %v2959_v19  ;;  %v2990_v19 = vld [vmem:[%s3661_s3 + $0x90] sm:$0xff]   ;;  %v3006_v51 = vld [vmem:[%s3661_s3 + $0x228] sm:$0xff]   ;;  %v3020_v0 = vld [vmem:[%s3661_s3 + $0x180] sm:$0xff]  }
 0x16c   : > { %2805 = vmatprep.subr.bf16.mxu0 %v2962_v22  ;;  %v3404_v12 = vsel %vm3317_vm3, 0, %v898_v7  ;;  %v3408_v13 = vsel %vm3325_vm5, %v935_v8, 0  ;;  %v937_v14 = vor.u32 %v936_v9, %v900_v5  ;;  %v905_v20 = vor.u32 %v903_v6, %v902_v11  ;;  %v3022_v3 = vld [vmem:[#allocation3 + $0x28] sm:$0xff]  }
 0x16d   : > { %2622 = vmatpush3.bf16.msra.mxu1 %v2961_v23  ;;  %v2993_v23 = vld [vmem:[%s3661_s3 + $0x88] sm:$0xff]   ;;  %v910_v4 = vshll.u32 %v3022_v3, 16 }
 0x16e   : > { %2623 = vmatprep.subr.bf16.mxu1 %v2963_v24  ;;  %v3420_v17 = vsel %vm3325_vm5, %v937_v14, 0  ;;  %v3441_v24 = vsel %vm3317_vm3, 0, %v905_v20 }
 0x16f   : > { %2806 = vmatpush3.bf16.msra.mxu0 %v2962_v22  ;;  %v2992_v22 = vld [vmem:[%s3661_s3 + $0x8] sm:$0xff]   ;;  %v938_v6 = vrot.slane %v910_v4, 1 }
 0x170   : > { %2807 = vmatprep.subr.bf16.mxu0 %v2965_v26 }
 0x171   : > { %2624 = vmatpush3.bf16.msra.mxu1 %v2964_v25  ;;  %v2997_v25 = vld [vmem:[#allocation3] sm:$0xff]  }
 0x172   : > { %2625 = vmatprep.subr.bf16.mxu1 %v2966_v27  ;;  %v2995_v27 = vld [vmem:[%s3661_s3] sm:$0xff]  }
 0x173   : > { %2808 = vmatpush3.bf16.msra.mxu0 %v2965_v26  ;;  %v2994_v26 = vld [vmem:[%s3661_s3 + $0x40] sm:$0xff]  }
 0x174   : > { %2809 = vmatprep.subr.bf16.mxu0 %v2968_v30 }
 0x175   : > { %2626 = vmatpush3.bf16.msra.mxu1 %v2967_v29  ;;  %v872_v29 = vshrl.u32 %v2997_v25, 16 }
 0x176   : > { %2663 = vmatprep.subr.bf16.mxu1 %v2970_v34  ;;  %v2998_v34 = vld [vmem:[%s3661_s3 + $0x1f8] sm:$0xff]  }
 0x177   : > { %2810 = vmatpush3.bf16.msra.mxu0 %v2968_v30  ;;  %v875_v30 = vshll.u32 %v2997_v25, 16  ;;  %v874_v32 = vrot.slane %v872_v29, 7 }
 0x178   : > { %1235 = vmatmul.mubr.bf16.vlgmr.msra.gmra.mxu1 %v3344_v46  ;;  %2819 = vmatprep.subr.bf16.mxu0 %v2973_v41 }
 0x179   : > { %2664 = vmatpush3.bf16.msra.mxu1 %v2971_v42  ;;  %1242 = vmatprep.mubr.bf16.mxu1 %v3329_v38  ;;  %v928_v35 = vrot.slane %v875_v30, 1  ;;  %v877_v36 = vor.u32 %v875_v30, %v874_v32 }
 0x17a   : > { %2665 = vmatprep.subr.bf16.mxu1 %v2974_v45  ;;  %2812 = vmatmul.mubr.bf16.vlgmr.msra.gmra.mxu0 %v3364_v55  ;;  %v3002_v45 = vld [vmem:[%s3661_s3 + $0x1b0] sm:$0xff]  }
 0x17b   : > { %2820 = vmatpush3.bf16.msra.mxu0 %v2973_v41  ;;  %2815 = vmatprep.mubr.bf16.mxu0 %v3408_v13  ;;  %v929_v39 = vor.u32 %v928_v35, %v872_v29  ;;  %v922_v41 = vsel %vm3317_vm3, 0, %v877_v36 }
 0x17c   : > { %2821 = vmatprep.subr.bf16.mxu0 %v2976_v52 }
 0x17d   : > { %2666 = vmatpush3.bf16.msra.mxu1 %v2975_v49  ;;  %v949_v42 = vsel %vm3325_vm5, %v929_v39, 0  ;;  %v3004_v49 = vld [vmem:[%s3661_s3 + $0x1e8] sm:$0xff]  }
 0x17e   : > { %2667 = vmatprep.subr.bf16.mxu1 %v2977_v54  ;;  %v3012_v54 = vld [vmem:[%s3661_s3 + $0x218] sm:$0xff]  }
 0x17f   : > { %2822 = vmatpush3.bf16.msra.mxu0 %v2976_v52  ;;  %v3009_v52 = vld [vmem:[%s3661_s3 + $0x220] sm:$0xff]  }
 0x180   : > { %1243 = vmatmul.mubr.bf16.gmra.mxu1 %v3375_v58  ;;  %2823 = vmatprep.subr.bf16.mxu0 %v2979_v57 }
 0x181   : > { %2668 = vmatpush3.bf16.msra.mxu1 %v2978_v56  ;;  %1250 = vmatprep.mubr.bf16.mxu1 %v3380_v60  ;;  %v3013_v56 = vld [vmem:[%s3661_s3 + $0x1d0] sm:$0xff]  }
 0x182   : > { %2669 = vmatprep.subr.bf16.mxu1 %v2980_v59  ;;  %2816 = vmatmul.mubr.bf16.gmra.mxu0 %v3420_v17  ;;  %v3015_v59 = vld [vmem:[%s3661_s3 + $0x210] sm:$0xff]  }
 0x183   : > { %2824 = vmatpush3.bf16.msra.mxu0 %v2979_v57  ;;  %2835 = vmatprep.mubr.bf16.mxu0 %v949_v42  ;;  %v3014_v57 = vld [vmem:[%s3661_s3 + $0x190] sm:$0xff]  }
 0x184   : > { %2825 = vmatprep.subr.bf16.mxu0 %v2982_v62 }
 0x185   : > { %2670 = vmatpush3.bf16.msra.mxu1 %v2981_v61  ;;  %v3016_v61 = vld [vmem:[%s3661_s3 + $0x1c8] sm:$0xff]  }
 0x186   : > { %2671 = vmatprep.subr.bf16.mxu1 %v2984_v1  ;;  %v3021_v1 = vld [vmem:[%s3661_s3 + $0x200] sm:$0xff]  }
 0x187   : > { %2826 = vmatpush3.bf16.msra.mxu0 %v2982_v62  ;;  %v3018_v62 = vld [vmem:[%s3661_s3 + $0x208] sm:$0xff]  }
 0x188   : > { %1251 = vmatmul.mubr.bf16.gmra.mxu1 %v3404_v12  ;;  %2827 = vmatprep.subr.bf16.mxu0 %v2987_v15 }
 0x189   : > { %2672 = vmatpush3.bf16.msra.mxu1 %v2985_v10  ;;  %1258 = vmatprep.mubr.bf16.mxu1 %v3394_v2 }
 0x18a   : > { %2673 = vmatprep.subr.bf16.mxu1 %v2988_v16 }
 0x18b   : > { %2828 = vmatpush3.bf16.msra.mxu0 %v2987_v15 }
 0x18c   : > { %2829 = vmatprep.subr.bf16.mxu0 %v2990_v19 }
 0x18d   : > { %2674 = vmatpush3.bf16.msra.mxu1 %v2989_v18 }
 0x18e   : > { %2675 = vmatprep.subr.bf16.mxu1 %v2991_v21 }
 0x18f   : > { %2830 = vmatpush3.bf16.msra.mxu0 %v2990_v19 }
 0x190   : > { %1259 = vmatmul.mubr.bf16.gmra.mxu1 %v3441_v24  ;;  %2831 = vmatprep.subr.bf16.mxu0 %v2993_v23 }
 0x191   : > { %2676 = vmatpush3.bf16.msra.mxu1 %v2992_v22  ;;  %1508 = vmatprep.mubr.bf16.mxu1 %v2997_v25 }
 0x192   : > { %2677 = vmatprep.subr.bf16.mxu1 %v2994_v26 }
 0x193   : > { %2832 = vmatpush3.bf16.msra.mxu0 %v2993_v23 }
 0x194   : > { %2833 = vmatprep.subr.bf16.mxu0 %v2996_v31 }
 0x195   : > { %2678 = vmatpush3.bf16.msra.mxu1 %v2995_v27 }
 0x196   : > { %2715 = vmatprep.subr.bf16.mxu1 %v2998_v34 }
 0x197   : > { %2834 = vmatpush3.bf16.msra.mxu0 %v2996_v31 }
 0x198   : > { %1509 = vmatmul.mubr.bf16.vlgmr.msra.gmra.mxu1 %v922_v41  ;;  %2843 = vmatprep.subr.bf16.mxu0 %v3466_v43 }
 0x199   : > { %2716 = vmatpush3.bf16.msra.mxu1 %v2999_v40  ;;  %1516 = vmatprep.mubr.bf16.mxu1 %v3306_v28  ;;  %v3007_v28 = vld [vmem:[%s3661_s3 + $0x1e0] sm:$0xff]  }
 0x19a   : > { %2717 = vmatprep.subr.bf16.mxu1 %v3001_v44  ;;  %2836 = vmatmul.mubr.bf16.vlgmr.msra.gmra.mxu0 %v3348_v47  ;;  %v3008_v47 = vld [vmem:[%s3661_s3 + $0x1a0] sm:$0xff]  }
 0x19b   : > { %2844 = vmatpush3.bf16.msra.mxu0 %v3466_v43  ;;  %2839 = vmatprep.mubr.bf16.mxu0 %v3364_v55 }
 0x19c   : > { %2845 = vmatprep.subr.bf16.mxu0 %v3477_v48 }
 0x19d   : > { %2718 = vmatpush3.bf16.msra.mxu1 %v3002_v45 }
 0x19e   : > { %2719 = vmatprep.subr.bf16.mxu1 %v3004_v49 }
 0x19f   : > { %2846 = vmatpush3.bf16.msra.mxu0 %v3477_v48 }
 0x1a0   : > { %1517 = vmatmul.mubr.bf16.gmra.mxu1 %v3344_v46  ;;  %2847 = vmatprep.subr.bf16.mxu0 %v3006_v51  ;;  %v3011_v46 = vld [vmem:[%s3661_s3 + $0x198] sm:$0xff]  }
 0x1a1   : > { %2720 = vmatpush3.bf16.msra.mxu1 %v3005_v50  ;;  %1524 = vmatprep.mubr.bf16.mxu1 %v3329_v38 }
 0x1a2   : > { %2721 = vmatprep.subr.bf16.mxu1 %v3007_v28  ;;  %2840 = vmatmul.mubr.bf16.gmra.mxu0 %v3408_v13 }
 0x1a3   : > { %2848 = vmatpush3.bf16.msra.mxu0 %v3006_v51  ;;  %2859 = vmatprep.mubr.bf16.mxu0 %v3364_v55  ;;  %v3017_v55 = vld [vmem:[%s3661_s3 + $0x188] sm:$0xff]  }
 0x1a4   : > { %2849 = vmatprep.subr.bf16.mxu0 %v3009_v52 }
 0x1a5   : > { %2722 = vmatpush3.bf16.msra.mxu1 %v3008_v47 }
 0x1a6   : > { %2723 = vmatprep.subr.bf16.mxu1 %v3010_v53 }
 0x1a7   : > { %2850 = vmatpush3.bf16.msra.mxu0 %v3009_v52 }
 0x1a8   : > { %1525 = vmatmul.mubr.bf16.gmra.mxu1 %v3375_v58  ;;  %2851 = vmatprep.subr.bf16.mxu0 %v3012_v54 }
 0x1a9   : > { %2724 = vmatpush3.bf16.msra.mxu1 %v3011_v46  ;;  %1532 = vmatprep.mubr.bf16.mxu1 %v3380_v60 }
 0x1aa   : > { %2725 = vmatprep.subr.bf16.mxu1 %v3013_v56 }
 0x1ab   : > { %2852 = vmatpush3.bf16.msra.mxu0 %v3012_v54 }
 0x1ac   : > { %2853 = vmatprep.subr.bf16.mxu0 %v3015_v59 }
 0x1ad   : > { %2726 = vmatpush3.bf16.msra.mxu1 %v3014_v57 }
 0x1ae   : > { %2727 = vmatprep.subr.bf16.mxu1 %v3016_v61 }
 0x1af   : > { %2854 = vmatpush3.bf16.msra.mxu0 %v3015_v59 }
 0x1b0   : > { %1533 = vmatmul.mubr.bf16.gmra.mxu1 %v3404_v12  ;;  %2855 = vmatprep.subr.bf16.mxu0 %v3018_v62 }
 0x1b1   : > { %2728 = vmatpush3.bf16.msra.mxu1 %v3017_v55  ;;  %1831 = vmatprep.mubr.bf16.mxu1 %v3329_v38  ;;  %v907_v38 = vshrl.u32 %v3022_v3, 16 }
 0x1b2   : > { %2729 = vmatprep.subr.bf16.mxu1 %v3019_v63 }
 0x1b3   : > { %2856 = vmatpush3.bf16.msra.mxu0 %v3018_v62 }
 0x1b4   : > { %2857 = vmatprep.subr.bf16.mxu0 %v3021_v1 }
 0x1b5   : > { %2730 = vmatpush3.bf16.msra.mxu1 %v3020_v0 }
 0x1b6   : > { %2867 = vmatprep.subr.bf16.mxu1 %v3466_v43 }
 0x1b7   : > { %2858 = vmatpush3.bf16.msra.mxu0 %v3021_v1 }
 0x1b8   : > { %1832 = vmatmul.mubr.bf16.vlgmr.msra.gmra.mxu1 %v3375_v58  ;;  %v909_v58 = vrot.slane %v907_v38, 7 }
 0x1b9   : > { %2875 = vmatpush3.bf16.msra.mxu1 %v3466_v43  ;;  %1839 = vmatprep.mubr.bf16.mxu1 %v3380_v60 }
 0x1ba   : > { %2868 = vmatprep.subr.bf16.mxu1 %v3477_v48  ;;  %2860 = vmatmul.mubr.bf16.vlgmr.msra.gmra.mxu0 %v3408_v13  ;;  %v912_v60 = vor.u32 %v910_v4, %v909_v58 }
 0x1bc   : > { %v927_v5 = vsel %vm3317_vm3, 0, %v912_v60 }
 0x1bd   : > { %2876 = vmatpush3.bf16.msra.mxu1 %v3477_v48 }
 0x1be   : > { %2869 = vmatprep.subr.bf16.mxu1 %v3006_v51 }
 0x1c0   : > { %1840 = vmatmul.mubr.bf16.gmra.mxu1 %v3404_v12 }
 0x1c1   : > { %2877 = vmatpush3.bf16.msra.mxu1 %v3006_v51  ;;  %1847 = vmatprep.mubr.bf16.mxu1 %v3394_v2  ;;  %v939_v2 = vor.u32 %v938_v6, %v907_v38 }
 0x1c2   : > { %2870 = vmatprep.subr.bf16.mxu1 %v3009_v52 }
 0x1c3   : > { %v954_v7 = vsel %vm3325_vm5, %v939_v2, 0 }
 0x1c5   : > { %2878 = vmatpush3.bf16.msra.mxu1 %v3009_v52 }
 0x1c6   : > { %2871 = vmatprep.subr.bf16.mxu1 %v3012_v54 }
 0x1c8   : > { %1848 = vmatmul.mubr.bf16.gmra.mxu1 %v3441_v24 }
 0x1c9   : > { %2879 = vmatpush3.bf16.msra.mxu1 %v3012_v54  ;;  %1855 = vmatprep.mubr.bf16.mxu1 %v3022_v3 }
 0x1ca   : > { %2872 = vmatprep.subr.bf16.mxu1 %v3015_v59 }
 0x1cd   : > { %2880 = vmatpush3.bf16.msra.mxu1 %v3015_v59 }
 0x1ce   : > { %2873 = vmatprep.subr.bf16.mxu1 %v3018_v62 }
 0x1d0   : > { %1856 = vmatmul.mubr.bf16.gmra.mxu1 %v927_v5 }
 0x1d1   : > { %2881 = vmatpush3.bf16.msra.mxu1 %v3018_v62  ;;  %2863 = vmatprep.mubr.bf16.mxu1 %v3420_v17 }
 0x1d2   : > { %2874 = vmatprep.subr.bf16.mxu1 %v3021_v1 }
 0x1d5   : > { %2882 = vmatpush3.bf16.msra.mxu1 %v3021_v1 }
 0x1d8   : > { %2864 = vmatmul.mubr.bf16.vlgmr.msra.gmra.mxu1 %v954_v7 }
 0x238   : > { %v2627_v8 = vpop.f32.mrf.mxu1 }
 0x23a   : > { %v2628_v9 = vpop.f32.mrf.mxu1  ;;  %v2813_v15 = vpop.f32.mrf.mxu0 }
 0x23b   : > { %v2629_v10 = vadd.f32 %v2628_v9, %v2627_v8 }
 0x23c   : > { %v2630_v11 = vpop.f32.mrf.mxu1  ;;  %v1301_v19 = vpop.f32.mrf.mxu0 }
 0x23d   : > { %v1302_v3 = vadd.f32 %v2629_v10, %v1301_v19 }
 0x23e   : > { %v2631_v12 = vpop.f32.mrf.mxu1  ;;  %v3565_v22 = vpop.f32.mrf.mxu0 }
 0x23f   : > { %v2632_v38 = vadd.f32 %v2631_v12, %v2630_v11 }
 0x240   : > { %v2633_v33 = vpop.f32.mrf.mxu1  ;;  %v1304_v25 = vpop.f32.mrf.mxu0 }
 0x241   : > { %v1305_v9 = vadd.f32 %v2632_v38, %v1304_v25 }
 0x242   : > { %v2634_v13 = vpop.f32.mrf.mxu1  ;;  %v3569_v27 = vpop.f32.mrf.mxu0 }
 0x243   : > { %v2635_v14 = vadd.f32 %v2634_v13, %v2633_v33 }
 0x244   : > { %v2636_v16 = vpop.f32.mrf.mxu1  ;;  %v3573_v32 = vpop.f32.mrf.mxu0 }
 0x245   : > { %v1310_v33 = vadd.f32 %v2813_v15, %v2635_v14 }
 0x246   : > { %v2637_v18 = vpop.f32.mrf.mxu1  ;;  %v3577_v39 = vpop.f32.mrf.mxu0 }
 0x247   : > { %v2638_v13 = vadd.f32 %v2637_v18, %v2636_v16 }
 0x248   : > { %v2639_v17 = vpop.f32.mrf.mxu1  ;;  %v3579_v42 = vpop.f32.mrf.mxu0 }
 0x249   : > { %v1313_v14 = vadd.f32 %v3565_v22, %v2638_v13 }
 0x24a   : > { %v2640_v20 = vpop.f32.mrf.mxu1 }
 0x24b   : > { %v3563_v21 = vadd.f32 %v2640_v20, %v2639_v17 }
 0x24c   : > { %v2642_v37 = vpop.f32.mrf.mxu1 }
 0x24e   : > { %v2643_v23 = vpop.f32.mrf.mxu1 }
 0x24f   : > { %v3567_v24 = vadd.f32 %v2643_v23, %v2642_v37 }
 0x250   : > { %v2645_v26 = vpop.f32.mrf.mxu1 }
 0x252   : > { %v2646_v29 = vpop.f32.mrf.mxu1 }
 0x253   : > { %v3571_v30 = vadd.f32 %v2646_v29, %v2645_v26 }
 0x254   : > { %v2648_v31 = vpop.f32.mrf.mxu1 }
 0x256   : > { %v2649_v34 = vpop.f32.mrf.mxu1 }
 0x257   : > { %v3575_v35 = vadd.f32 %v2649_v34, %v2648_v31  ;;  %v3608_v34 = vld [vmem:[%s3662_s4] ss:$0 sm:$0xff] }
 0x258   : > { %v2679_v36 = vpop.f32.mrf.mxu1 }
 0x25a   : > { %v2680_v40 = vpop.f32.mrf.mxu1  ;;  %v2837_v44 = vpop.f32.mrf.mxu0 }
 0x25b   : > { %v2681_v0 = vadd.f32 %v2680_v40, %v2679_v36 }
 0x25c   : > { %v2682_v41 = vpop.f32.mrf.mxu1  ;;  %v1575_v49 = vpop.f32.mrf.mxu0 }
 0x25d   : > { %v1511_v5 = vadd.f32 %v2681_v0, %v1302_v3 }
 0x25e   : > { %v2683_v43 = vpop.f32.mrf.mxu1  ;;  %v2838_v28 = vpop.f32.mrf.mxu0 }
 0x25f   : > { %v2684_v60 = vadd.f32 %v2683_v43, %v2682_v41  ;;  %v1576_v37 = vadd.f32 %v1575_v49, %v1511_v5 }
 0x260   : > { %v2685_v45 = vpop.f32.mrf.mxu1  ;;  %v1578_v53 = vpop.f32.mrf.mxu0 }
 0x261   : > { %v1514_v23 = vadd.f32 %v2684_v60, %v1305_v9 }
 0x262   : > { %v2686_v48 = vpop.f32.mrf.mxu1  ;;  %v3587_v54 = vpop.f32.mrf.mxu0 }
 0x263   : > { %v2687_v2 = vadd.f32 %v2686_v48, %v2685_v45  ;;  %v1579_v15 = vadd.f32 %v1578_v53, %v1514_v23  ;;  %v1326_v23 = vadd.f32 %v3569_v27, %v3571_v30  ;;  %v1321_v27 = vadd.f32 %v3567_v24, %v3579_v42 }
 0x264   : > { %v2688_v50 = vpop.f32.mrf.mxu1  ;;  %v3593_v59 = vpop.f32.mrf.mxu0 }
 0x265   : > { %v1519_v10 = vadd.f32 %v2687_v2, %v1310_v33 }
 0x266   : > { %v2689_v51 = vpop.f32.mrf.mxu1  ;;  %v3599_v62 = vpop.f32.mrf.mxu0 }
 0x267   : > { %v2690_v19 = vadd.f32 %v2689_v51, %v2688_v50  ;;  %v1584_v40 = vadd.f32 %v2837_v44, %v1519_v10 }
 0x268   : > { %v3581_v47 = vpop.f32.mrf.mxu1  ;;  %v3603_v58 = vpop.f32.mrf.mxu0 }
 0x269   : > { %v1522_v43 = vadd.f32 %v2690_v19, %v1313_v14 }
 0x26a   : > { %v3583_v52 = vpop.f32.mrf.mxu1 }
 0x26b   : > { %v1587_v38 = vadd.f32 %v2838_v28, %v1522_v43 }
 0x26c   : > { %v3585_v46 = vpop.f32.mrf.mxu1 }
 0x26e   : > { %v3589_v56 = vpop.f32.mrf.mxu1 }
 0x270   : > { %v3591_v57 = vpop.f32.mrf.mxu1 }
 0x272   : > { %v3595_v61 = vpop.f32.mrf.mxu1 }
 0x273   : > { %v2699_v28 = vadd.f32 %v3595_v61, %v3591_v57  ;;  %v1329_v57 = vadd.f32 %v3577_v39, %v3575_v35 }
 0x274   : > { %v3597_v55 = vpop.f32.mrf.mxu1 }
 0x275   : > { %v1535_v10 = vadd.f32 %v2699_v28, %v1326_v23 }
 0x276   : > { %v3601_v63 = vpop.f32.mrf.mxu1 }
 0x278   : > { %v2731_v1 = vpop.f32.mrf.mxu1 }
 0x27a   : > { %v2732_v4 = vpop.f32.mrf.mxu1  ;;  %v2861_v7 = vpop.f32.mrf.mxu0 }
 0x27b   : > { %v2733_v6 = vadd.f32 %v2732_v4, %v2731_v1 }
 0x27c   : > { %v2734_v8 = vpop.f32.mrf.mxu1  ;;  %v1898_v17 = vpop.f32.mrf.mxu0 }
 0x27d   : > { %v1899_v26 = vadd.f32 %v2733_v6, %v1898_v17 }
 0x27e   : > { %v2735_v20 = vpop.f32.mrf.mxu1  ;;  %v2862_v11 = vpop.f32.mrf.mxu0 }
 0x27f   : > { %v2736_v29 = vadd.f32 %v2735_v20, %v2734_v8  ;;  %v1929_v31 = vadd.f32 %v1899_v26, %v1576_v37  ;;  %v2693_v20 = vadd.f32 %v3583_v52, %v3581_v47  ;;  %v1318_v26 = vadd.f32 %v3563_v21, %v3573_v32 }
 0x280   : > { %v2737_v12 = vpop.f32.mrf.mxu1  ;;  %v1901_v36 = vpop.f32.mrf.mxu0  ;;  %v2696_v47 = vadd.f32 %v3589_v56, %v3585_v46  ;;  %v1600_v32 = vadd.f32 %v3587_v54, %v1535_v10 }
 0x281   : > { %v1902_v16 = vadd.f32 %v2736_v29, %v1901_v36  ;;  %v1944_v45 = vadd.f32 %v3608_v34, %v1929_v31 }
 0x282   : > { %v2738_v25 = vpop.f32.mrf.mxu1  ;;  %v1530_v36 = vadd.f32 %v2696_v47, %v1321_v27 }
 0x283   : > { %v2739_v18 = vadd.f32 %v2738_v25, %v2737_v12  ;;  %v1930_v48 = vadd.f32 %v1902_v16, %v1579_v15  ;;  %v1952_v4 = vmax.f32 %v1944_v45, 0.0  ;;  %v1527_v12 = vadd.f32 %v2693_v20, %v1318_v26 }
 0x284   : > { %v2740_v41 = vpop.f32.mrf.mxu1  ;;  %v1595_v16 = vadd.f32 %v3603_v58, %v1530_v36 }
 0x285   : > { %v1907_v49 = vadd.f32 %v2861_v7, %v2739_v18  ;;  %v1945_v51 = vadd.f32 %v3608_v34, %v1930_v48 }
 0x286   : > { %v2741_v50 = vpop.f32.mrf.mxu1 }
 0x287   : > { %v1931_v0 = vadd.f32 %v1907_v49, %v1584_v40  ;;  %v2742_v1 = vadd.f32 %v2741_v50, %v2740_v41  ;;  %v1953_v22 = vmax.f32 %v1945_v51, 0.0 }
 0x288   : > { %v2743_v3 = vpop.f32.mrf.mxu1 }
 0x289   : > { %v1910_v53 = vadd.f32 %v2862_v11, %v2742_v1  ;;  %v2572_v44 = vpack.c.bf16 %v1953_v22, %v1952_v4  ;;  %v1946_v5 = vadd.f32 %v3608_v34, %v1931_v0  ;;  %v2702_v11 = vadd.f32 %v3601_v63, %v3597_v55 }
 0x28a   : > { %v2744_v60 = vpop.f32.mrf.mxu1  ;;  %v1592_v55 = vadd.f32 %v3593_v59, %v1527_v12 }
 0x28b   : > { %v1932_v6 = vadd.f32 %v1910_v53, %v1587_v38  ;;  %2573 = vst [vmem:[%s3158_s12] sm:$0xff] %v2572_v44   ;;  %v1954_v9 = vmax.f32 %v1946_v5, 0.0  ;;  %v1538_v61 = vadd.f32 %v2702_v11, %v1329_v57  ;;  %v2745_v21 = vadd.f32 %v2744_v60, %v2743_v3 }
 0x28c   : > { %v2746_v2 = vpop.f32.mrf.mxu1 }
 0x28d   : > { %v1947_v7 = vadd.f32 %v3608_v34, %v1932_v6  ;;  %v1603_v56 = vadd.f32 %v3599_v62, %v1538_v61 }
 0x28e   : > { %v2747_v8 = vpop.f32.mrf.mxu1 }
 0x28f   : > { %v1955_v33 = vmax.f32 %v1947_v7, 0.0  ;;  %v2748_v15 = vadd.f32 %v2747_v8, %v2746_v2 }
 0x290   : > { %v2749_v13 = vpop.f32.mrf.mxu1 }
 0x291   : > { %v2577_v17 = vpack.c.bf16 %v1955_v33, %v1954_v9 }
 0x292   : > { %v2750_v37 = vpop.f32.mrf.mxu1 }
 0x293   : > { %2594 = vst [vmem:[%s3158_s12 + $0x8] sm:$0xff] %v2577_v17   ;;  %v2751_v52 = vadd.f32 %v2750_v37, %v2749_v13 }
 0x294   : > { %v2752_v29 = vpop.f32.mrf.mxu1 }
 0x296   : > { %v2753_v19 = vpop.f32.mrf.mxu1 }
 0x297   : > { %v2754_v25 = vadd.f32 %v2753_v19, %v2752_v29 }
 0x298   : > { %v2865_v30 = vpop.f32.mrf.mxu1 }
 0x299   : > { %v1923_v31 = vadd.f32 %v2865_v30, %v2751_v52 }
 0x29a   : > { %v1914_v63 = vpop.f32.mrf.mxu1 }
 0x29b   : > { %v1935_v14 = vadd.f32 %v1923_v31, %v1600_v32  ;;  %v1915_v35 = vadd.f32 %v2745_v21, %v1914_v63 }
 0x29c   : > { %v2866_v39 = vpop.f32.mrf.mxu1 }
 0x29d   : > { %v1933_v46 = vadd.f32 %v1915_v35, %v1592_v55  ;;  %v1926_v24 = vadd.f32 %v2866_v39, %v2754_v25  ;;  %v1950_v54 = vadd.f32 %v3608_v34, %v1935_v14 }
 0x29e   : > { %v1917_v42 = vpop.f32.mrf.mxu1 }
 0x29f   : > { %v1936_v18 = vadd.f32 %v1926_v24, %v1603_v56  ;;  %v1918_v59 = vadd.f32 %v2748_v15, %v1917_v42  ;;  %v1948_v40 = vadd.f32 %v3608_v34, %v1933_v46  ;;  %v1958_v45 = vmax.f32 %v1950_v54, 0.0 }
 0x2a1   : > { %v1951_v41 = vadd.f32 %v3608_v34, %v1936_v18  ;;  %v1934_v43 = vadd.f32 %v1918_v59, %v1595_v16  ;;  %v1956_v62 = vmax.f32 %v1948_v40, 0.0 }
 0x2a3   : > { %v1959_v48 = vmax.f32 %v1951_v41, 0.0  ;;  %v1949_v49 = vadd.f32 %v3608_v34, %v1934_v43 }
 0x2a5   : > { %v2587_v50 = vpack.c.bf16 %v1959_v48, %v1958_v45  ;;  %v1957_v51 = vmax.f32 %v1949_v49, 0.0 }
 0x2a7   : > { %2596 = vst [vmem:[%s3158_s12 + $0x18] sm:$0xff] %v2587_v50   ;;  %v2582_v0 = vpack.c.bf16 %v1957_v51, %v1956_v62 }
 0x2a9   : > { %2595 = vst [vmem:[%s3158_s12 + $0x10] sm:$0xff] %v2582_v0  }
 0x2aa PF: > { %s15_s22 = sadd.s32 1, %s3071_s22   ;;  %s3671_s7 = sld [smem:[#allocation13_spill]] }
 0x2ab   : > { %p12_p1 = scmp.ge.s32.totalorder %s15_s22, 10   ;;  %s3672_s18 = smov %s3063_s20 }
 0x2ac   : > { %s3673_s19 = smov %s3067_s21  ;;  %s3674_s20 = smov %s3677_s23 }
 0x2ad   :  { %14 = sbr.rel (!%p12_p1) target bundleno = 3 (0x3), region = 332 }
 0x2b0   : > { %s3675_s21 = smov %s3671_s7 }
 0x2b2   :  { %2032 = vsyncmov [#allocation4] }
 0x2b5   :  { %s2033_s12 = vpop.sfrf %2032 }
 0x2b6   :  { %p2506_p2 = scmp.ne.s32.totalorder %s2033_s12, 0 }
 0x2b8   :  { %2037 = shalt.err (%p2506_p2)  }
 0x2b9   :  { %2039 = vsyncmov [#allocation4 + $0x1] }
 0x2bc   :  { %s2040_s15 = vpop.sfrf %2039 }
 0x2bd   :  { %p2507_p3 = scmp.ne.s32.totalorder %s2040_s15, 0 }
 0x2bf   :  { %2044 = shalt.err (%p2507_p3)  }
 0x2c0   :  { %2046 = vsyncmov [#allocation4 + $0x2] }
 0x2c3   :  { %s2047_s17 = vpop.sfrf %2046 }
 0x2c4   :  { %p2508_p4 = scmp.ne.s32.totalorder %s2047_s17, 0 }
 0x2c6   :  { %2051 = shalt.err (%p2508_p4)  }
 0x2c7   :  { %2053 = vsyncmov [#allocation4 + $0x3] }
 0x2ca   :  { %s2054_s13 = vpop.sfrf %2053 }
 0x2cb   :  { %p2509_p5 = scmp.ne.s32.totalorder %s2054_s13, 0 }
 0x2cd   :  { %2058 = shalt.err (%p2509_p5)  }
 0x2ce   :  { %2060 = vsyncmov [#allocation4 + $0x4] }
 0x2d1   :  { %s2061_s23 = vpop.sfrf %2060 }
 0x2d2   :  { %p2510_p6 = scmp.ne.s32.totalorder %s2061_s23, 0 }
 0x2d4   :  { %2065 = shalt.err (%p2510_p6)  }
 0x2d5   :  { %2067 = vsyncmov [#allocation4 + $0x5] }
 0x2d8   :  { %s2068_s0 = vpop.sfrf %2067 }
 0x2d9   :  { %p2511_p7 = scmp.ne.s32.totalorder %s2068_s0, 0 }
 0x2db   :  { %2072 = shalt.err (%p2511_p7)  }

</bundles_post_ra>
